<compile_context>
chip_gen: v7x
topology: tpu7x:2x2x1
jax: 0.10.0
libtpu: 0.0.40
codegen_flags: <defaults>
</compile_context>

<pallas_src>
import functools

import jax
import jax.numpy as jnp
from jax import lax
from jax.experimental import pallas as pl
from jax.experimental.pallas import tpu as pltpu

EPS = 1e-5                      # nn.BatchNorm2d default eps
VMEM_LIMIT = 48 * 1024 * 1024   # fits v7x (64 MiB/TC); plenty for these tiles


# ----------------------------------------------------------------------------
# Pallas kernels
# ----------------------------------------------------------------------------
def _conv_kernel(*refs, bb, H, W, Ci, Co, fuse):
    """3x3 conv (3 banded MXU matmuls) with optional fused pre-BN + ReLU.

    Refs (in order):
      a_ref   : (bb, H, W*Ci)   bf16  lane-dense activation (un-normalized if fuse)
      sc_ref  : (1, W*Ci)       f32   [only if fuse] BN scale, tiled along W
      sh_ref  : (1, W*Ci)       f32   [only if fuse] BN shift, tiled along W
      w_ref   : (3, W*Ci, W*Co) bf16  banded weights (dx taps + horiz pad folded in)
      y_ref   : (bb, H, W*Co)   bf16  raw conv output (pre-BN)
      sum_ref : (1, 1, W*Co)    f32   per-lane sum of y over this block's rows
      ssq_ref : (1, 1, W*Co)    f32   per-lane sum of y*y
      pad_ref : (bb, H+2, W*Ci) bf16  VMEM scratch with zero top/bottom halo rows
    """
    if fuse:
        a_ref, sc_ref, sh_ref, w_ref, y_ref, sum_ref, ssq_ref, pad_ref = refs
    else:
        a_ref, w_ref, y_ref, sum_ref, ssq_ref, pad_ref = refs

    WCo = W * Co

    # Zero the halo scratch every step (cheap; keeps the borders correct no
    # matter which TensorCore runs which grid step), then fill the interior.
    pad_ref[...] = jnp.zeros_like(pad_ref)
    a = a_ref[...]
    if fuse:
        # Fused BatchNorm-apply + ReLU of the previous layer (f32 math on VPU).
        h = a.astype(jnp.float32) * sc_ref[...] + sh_ref[...]
        a = jnp.maximum(h, 0.0).astype(jnp.bfloat16)
    pad_ref[:, 1:H + 1, :] = a

    tot = jnp.zeros((1, WCo), jnp.float32)
    tot2 = jnp.zeros((1, WCo), jnp.float32)
    for b in range(bb):
        xb = pad_ref[b]                                   # (H+2, W*Ci) bf16
        acc = jnp.zeros((H, WCo), jnp.float32)
        for dy in range(3):                               # 3 MXU matmuls, f32 acc
            acc += jnp.dot(xb[dy:dy + H, :], w_ref[dy],
                           preferred_element_type=jnp.float32)
        y_ref[b] = acc.astype(jnp.bfloat16)
        tot = tot + jnp.sum(acc, axis=0, keepdims=True)
        tot2 = tot2 + jnp.sum(acc * acc, axis=0, keepdims=True)
    sum_ref[0] = tot
    ssq_ref[0] = tot2


def _bn_relu_kernel(y_ref, sc_ref, sh_ref, o_ref):
    """Final epilogue: out = max(y*scale + shift, 0); lane-dense, f32 math."""
    y = y_ref[...].astype(jnp.float32)
    o_ref[...] = jnp.maximum(y * sc_ref[...] + sh_ref[...], 0.0)


# ----------------------------------------------------------------------------
# Host-side helpers
# ----------------------------------------------------------------------------
def _pick_bb(n):
    """Largest per-step batch block that still leaves >= 2 grid steps (v7x)."""
    if n < 2:
        return max(n, 1)
    for d in range(n // 2, 0, -1):
        if n % d == 0:
            return d
    return 1


def _banded_weight(w_hwio, W):
    """(3,3,Ci,Co) conv weights -> (3, W*Ci, W*Co) banded matrices (bf16).

    B[dy][u*Ci+ci, v*Co+co] = w[dy, u-v+1, ci, co] for |u-v| <= 1, else 0, so a
    lane-dense activation row (W*Ci lanes) times B[dy] gives the dy contribution
    of the lane-dense output row (W*Co lanes) with horizontal padding implicit.
    """
    bands = []
    for dy in range(3):
        b = sum(jnp.kron(jnp.eye(W, k=1 - dx, dtype=w_hwio.dtype), w_hwio[dy, dx])
                for dx in range(3))
        bands.append(b)
    # TODO(synk): banded weights scale as W^2*Ci*Co; for large W (or Ci,Co >= 128)
    # switch to a channel-major im2col kernel with H-row halo tiling instead.
    return jnp.stack(bands).astype(jnp.bfloat16)


def _bn_affine(s, q, gamma, beta, count, W, Co):
    """Tiny per-channel reduction: per-lane (sum, sumsq) partials -> fused BN
    scale/shift, tiled along W to broadcast over the lane-dense (.., W*Co)."""
    s = s.reshape(-1, W, Co).sum(axis=(0, 1))
    q = q.reshape(-1, W, Co).sum(axis=(0, 1))
    mean = s / count
    # TODO(synk): E[y^2]-mean^2 in f32; use a shifted two-pass variance if
    # activations grow large enough for cancellation to matter.
    var = jnp.maximum(q / count - mean * mean, 0.0)
    scale = gamma * lax.rsqrt(var + EPS)
    shift = beta - mean * scale
    return (jnp.tile(scale, W).reshape(1, W * Co),
            jnp.tile(shift, W).reshape(1, W * Co))


def _conv_pass(a_ld, w_banded, H, W, Ci, Co, pre, bb):
    """One 3x3 conv layer. `pre=(scale_row, shift_row)` fuses the previous
    layer's BatchNorm+ReLU onto the input as it is consumed."""
    N = a_ld.shape[0]
    nsteps = N // bb
    WCi, WCo = W * Ci, W * Co
    fuse = pre is not None

    kernel = functools.partial(_conv_kernel, bb=bb, H=H, W=W, Ci=Ci, Co=Co,
                               fuse=fuse)
    in_specs = [pl.BlockSpec((bb, H, WCi), lambda n: (n, 0, 0))]
    args = [a_ld]
    if fuse:
        in_specs += [pl.BlockSpec((1, WCi), lambda n: (0, 0)),
                     pl.BlockSpec((1, WCi), lambda n: (0, 0))]
        args += [pre[0], pre[1]]
    in_specs.append(pl.BlockSpec((3, WCi, WCo), lambda n: (0, 0, 0)))
    args.append(w_banded)

    y, s, q = pl.pallas_call(
        kernel,
        grid=(nsteps,),
        in_specs=in_specs,
        out_specs=(pl.BlockSpec((bb, H, WCo), lambda n: (n, 0, 0)),
                   pl.BlockSpec((1, 1, WCo), lambda n: (n, 0, 0)),
                   pl.BlockSpec((1, 1, WCo), lambda n: (n, 0, 0))),
        out_shape=(jax.ShapeDtypeStruct((N, H, WCo), jnp.bfloat16),
                   jax.ShapeDtypeStruct((nsteps, 1, WCo), jnp.float32),
                   jax.ShapeDtypeStruct((nsteps, 1, WCo), jnp.float32)),
        scratch_shapes=[pltpu.VMEM((bb, H + 2, WCi), jnp.bfloat16)],
        compiler_params=pltpu.CompilerParams(
            dimension_semantics=("parallel",),
            vmem_limit_bytes=VMEM_LIMIT),
    )(*args)
    return y, s, q


def _bn_relu_apply(y, scale_row, shift_row, H, W, Co, bb):
    N = y.shape[0]
    nsteps = N // bb
    WCo = W * Co
    return pl.pallas_call(
        _bn_relu_kernel,
        grid=(nsteps,),
        in_specs=[pl.BlockSpec((bb, H, WCo), lambda n: (n, 0, 0)),
                  pl.BlockSpec((1, WCo), lambda n: (0, 0)),
                  pl.BlockSpec((1, WCo), lambda n: (0, 0))],
        out_specs=pl.BlockSpec((bb, H, WCo), lambda n: (n, 0, 0)),
        out_shape=jax.ShapeDtypeStruct((N, H, WCo), jnp.float32),
        compiler_params=pltpu.CompilerParams(
            dimension_semantics=("parallel",),
            vmem_limit_bytes=VMEM_LIMIT),
    )(y, scale_row, shift_row)


def conv_block(x_nhwc, params):
    """ConvBlock.forward: (conv3x3 -> BatchNorm(train) -> ReLU) x 2, NHWC."""
    N, H, W, C = x_nhwc.shape
    bb = _pick_bb(N)
    h_ld = x_nhwc.reshape(N, H, W * C).astype(jnp.bfloat16)   # lane-dense bf16
    pre = None            # (scale_row, shift_row) fused into the next conv
    Ci = C
    for (w, _b, g, be) in params:           # conv bias dropped: cancels under BN
        Co = w.shape[-1]
        y, s, q = _conv_pass(h_ld, _banded_weight(w, W), H, W, Ci, Co, pre, bb)
        pre = _bn_affine(s, q, g, be, jnp.float32(N * H * W), W, Co)
        h_ld, Ci = y, Co
    out = _bn_relu_apply(h_ld, pre[0], pre[1], H, W, Ci, bb)
    return out.reshape(N, H, W, Ci)


# ----------------------------------------------------------------------------
# Pure-JAX references
# ----------------------------------------------------------------------------
def _ref_convblock_f32(x, params):
    """Full-f32 reference keeping the conv bias (it cancels under train-mode BN)."""
    h = x
    for (w, b, g, be) in params:
        y = lax.conv_general_dilated(
            h, w, window_strides=(1, 1), padding="SAME",
            dimension_numbers=("NHWC", "HWIO", "NHWC")) + b
        mean = jnp.mean(y, axis=(0, 1, 2))
        var = jnp.mean((y - mean) ** 2, axis=(0, 1, 2))
        h = jnp.maximum((y - mean) * lax.rsqrt(var + EPS) * g + be, 0.0)
    return h


def _ref_convblock_matched(x, params):
    """Reference mirroring the kernel's rounding: bf16 matmul operands, f32
    accumulation/stats, bf16 storage of pre-BN activations, no conv bias."""
    h = x
    for (w, _b, g, be) in params:
        y = lax.conv_general_dilated(
            h.astype(jnp.bfloat16), w.astype(jnp.bfloat16),
            window_strides=(1, 1), padding="SAME",
            dimension_numbers=("NHWC", "HWIO", "NHWC"),
            preferred_element_type=jnp.float32)
        mean = jnp.mean(y, axis=(0, 1, 2))
        var = jnp.maximum(jnp.mean(y * y, axis=(0, 1, 2)) - mean * mean, 0.0)
        scale = g * lax.rsqrt(var + EPS)
        shift = be - mean * scale
        yb = y.astype(jnp.bfloat16).astype(jnp.float32)
        h = jnp.maximum(yb * scale + shift, 0.0)
    return h


# ----------------------------------------------------------------------------
# Deterministic parameter init (mirrors the module's parameter shapes)
# ----------------------------------------------------------------------------
def _init_layer(key, cin, cout):
    k1, k2, k3, k4 = jax.random.split(key, 4)
    fan_in = 3 * 3 * cin
    w = jax.random.normal(k1, (3, 3, cin, cout), jnp.float32) / jnp.sqrt(fan_in)
    b = 0.05 * jax.random.normal(k2, (cout,), jnp.float32)
    gamma = 1.0 + 0.1 * jax.random.normal(k3, (cout,), jnp.float32)
    beta = 0.1 * jax.random.normal(k4, (cout,), jnp.float32)
    return (w, b, gamma, beta)


def init_params(key, cin, cout):
    k1, k2 = jax.random.split(key)
    return (_init_layer(k1, cin, cout), _init_layer(k2, cout, cout))


if __name__ == "__main__":
    key = jax.random.PRNGKey(0)
    kx, kp = jax.random.split(key)

    N, C_in, C_out, HW = 2, 4, 32, 16
    x_nchw = jax.random.normal(kx, (N, C_in, HW, HW), jnp.float32)
    params = init_params(kp, C_in, C_out)

    x_nhwc = jnp.transpose(x_nchw, (0, 2, 3, 1))          # NCHW -> NHWC
    fwd = jax.jit(conv_block)
    out_nhwc = fwd(x_nhwc, params)
    out_nchw = jnp.transpose(out_nhwc, (0, 3, 1, 2))      # back to PyTorch layout
    jax.block_until_ready(out_nchw)
    assert out_nchw.shape == (N, C_out, HW, HW), out_nchw.shape

    # Check vs. a reference that mirrors the kernel's bf16 rounding.
    ref_m = jnp.transpose(_ref_convblock_matched(x_nhwc, params), (0, 3, 1, 2))
    err_m = float(jnp.max(jnp.abs(out_nchw - ref_m)))
    assert err_m < 4e-2, f"matched-reference max abs err {err_m}"

    # Looser sanity check vs. a full-f32 reference (with conv bias) — bounds
    # the bf16 cost and validates the bias-cancellation under train-mode BN.
    ref_f = jnp.transpose(_ref_convblock_f32(x_nhwc, params), (0, 3, 1, 2))
    err_f = float(jnp.max(jnp.abs(out_nchw - ref_f)))
    assert err_f < 1e-1, f"f32-reference max abs err {err_f}"

    print("KERNEL_OK")
</pallas_src>

<mosaic_0001>
module attributes {stable_mosaic.version = 11 : i64} {
  func.func @_conv_kernel(%arg0: i32, %arg1: memref<1x16x64xbf16, #tpu.memory_space<vmem>>, %arg2: memref<3x64x512xbf16, #tpu.memory_space<vmem>>, %arg3: memref<1x16x512xbf16, #tpu.memory_space<vmem>>, %arg4: memref<1x1x512xf32, #tpu.memory_space<vmem>>, %arg5: memref<1x1x512xf32, #tpu.memory_space<vmem>>, %arg6: memref<1x18x64xbf16, #tpu.memory_space<vmem>>) attributes {dimension_semantics = [#tpu.dimension_semantics<parallel>], iteration_bounds = array<i64: 2>, scalar_prefetch = 0 : i64, scratch_operands = 1 : i64, tpu.core_type = #tpu.core_type<tc>, window_params = [{transform_indices = @transform_0, window_bounds = array<i64: 1, 16, 64>}, {pipeline_mode = #tpu.pipeline_mode<synchronous>, transform_indices = @transform_1, window_bounds = array<i64: 3, 64, 512>}, {transform_indices = @transform_2, window_bounds = array<i64: 1, 16, 512>}, {transform_indices = @transform_3, window_bounds = array<i64: 1, 1, 512>}, {transform_indices = @transform_4, window_bounds = array<i64: 1, 1, 512>}]} {
    %cst = arith.constant 0.000000e+00 : bf16
    %0 = vector.broadcast %cst : bf16 to vector<1x18x64xbf16>
    %c0 = arith.constant 0 : index
    %c0_0 = arith.constant 0 : index
    %c0_1 = arith.constant 0 : index
    %1 = vector.load %arg6[%c0, %c0_0, %c0_1] : memref<1x18x64xbf16, #tpu.memory_space<vmem>>, vector<1x18x64xbf16>
    tpu.vector_store %arg6[%c0, %c0_0, %c0_1], %0 {strides = array<i32>} : memref<1x18x64xbf16, #tpu.memory_space<vmem>>, vector<1x18x64xbf16>,
    %c0_2 = arith.constant 0 : index
    %c0_3 = arith.constant 0 : index
    %c0_4 = arith.constant 0 : index
    %2 = vector.load %arg1[%c0_2, %c0_3, %c0_4] : memref<1x16x64xbf16, #tpu.memory_space<vmem>>, vector<1x16x64xbf16>
    %c0_5 = arith.constant 0 : index
    %c1 = arith.constant 1 : index
    %c0_6 = arith.constant 0 : index
    %3 = vector.load %arg6[%c0_5, %c1, %c0_6] : memref<1x18x64xbf16, #tpu.memory_space<vmem>>, vector<1x16x64xbf16>
    tpu.vector_store %arg6[%c0_5, %c1, %c0_6], %2 {strides = array<i32>} : memref<1x18x64xbf16, #tpu.memory_space<vmem>>, vector<1x16x64xbf16>,
    %cst_7 = arith.constant 0.000000e+00 : f32
    %4 = vector.broadcast %cst_7 : f32 to vector<1x512xf32>
    %cst_8 = arith.constant 0.000000e+00 : f32
    %5 = vector.broadcast %cst_8 : f32 to vector<1x512xf32>
    %c0_9 = arith.constant 0 : index
    %c0_10 = arith.constant 0 : index
    %c0_11 = arith.constant 0 : index
    %6 = vector.load %arg6[%c0_9, %c0_10, %c0_11] : memref<1x18x64xbf16, #tpu.memory_space<vmem>>, vector<1x18x64xbf16>
    %7 = vector.shape_cast %6 : vector<1x18x64xbf16> to vector<18x64xbf16>
    %cst_12 = arith.constant 0.000000e+00 : f32
    %8 = vector.broadcast %cst_12 : f32 to vector<16x512xf32>
    %9 = vector.extract_strided_slice %7 {offsets = [0, 0], sizes = [16, 64], strides = [1, 1]} : vector<18x64xbf16> to vector<16x64xbf16>
    %c0_13 = arith.constant 0 : index
    %c0_14 = arith.constant 0 : index
    %c0_15 = arith.constant 0 : index
    %10 = vector.load %arg2[%c0_13, %c0_14, %c0_15] : memref<3x64x512xbf16, #tpu.memory_space<vmem>>, vector<1x64x512xbf16>
    %11 = vector.shape_cast %10 : vector<1x64x512xbf16> to vector<64x512xbf16>
    %cst_16 = arith.constant dense<0.000000e+00> : vector<16x512xf32>
    %12 = tpu.matmul %9, %11, %cst_16 {dimension_numbers = #tpu.dot_dimension_numbers<[1], [0], [0], [1], [0, 0, 1, 1], [], []>} : vector<16x64xbf16>, vector<64x512xbf16>, vector<16x512xf32> -> vector<16x512xf32>
    %13 = arith.addf %8, %12 : vector<16x512xf32>
    %14 = vector.extract_strided_slice %7 {offsets = [1, 0], sizes = [16, 64], strides = [1, 1]} : vector<18x64xbf16> to vector<16x64xbf16>
    %c1_17 = arith.constant 1 : index
    %c0_18 = arith.constant 0 : index
    %c0_19 = arith.constant 0 : index
    %15 = vector.load %arg2[%c1_17, %c0_18, %c0_19] : memref<3x64x512xbf16, #tpu.memory_space<vmem>>, vector<1x64x512xbf16>
    %16 = vector.shape_cast %15 : vector<1x64x512xbf16> to vector<64x512xbf16>
    %cst_20 = arith.constant dense<0.000000e+00> : vector<16x512xf32>
    %17 = tpu.matmul %14, %16, %cst_20 {dimension_numbers = #tpu.dot_dimension_numbers<[1], [0], [0], [1], [0, 0, 1, 1], [], []>} : vector<16x64xbf16>, vector<64x512xbf16>, vector<16x512xf32> -> vector<16x512xf32>
    %18 = arith.addf %13, %17 : vector<16x512xf32>
    %19 = vector.extract_strided_slice %7 {offsets = [2, 0], sizes = [16, 64], strides = [1, 1]} : vector<18x64xbf16> to vector<16x64xbf16>
    %c2 = arith.constant 2 : index
    %c0_21 = arith.constant 0 : index
    %c0_22 = arith.constant 0 : index
    %20 = vector.load %arg2[%c2, %c0_21, %c0_22] : memref<3x64x512xbf16, #tpu.memory_space<vmem>>, vector<1x64x512xbf16>
    %21 = vector.shape_cast %20 : vector<1x64x512xbf16> to vector<64x512xbf16>
    %cst_23 = arith.constant dense<0.000000e+00> : vector<16x512xf32>
    %22 = tpu.matmul %19, %21, %cst_23 {dimension_numbers = #tpu.dot_dimension_numbers<[1], [0], [0], [1], [0, 0, 1, 1], [], []>} : vector<16x64xbf16>, vector<64x512xbf16>, vector<16x512xf32> -> vector<16x512xf32>
    %23 = arith.addf %18, %22 : vector<16x512xf32>
    %24 = arith.truncf %23 : vector<16x512xf32> to vector<16x512xbf16>
    %c0_24 = arith.constant 0 : index
    %c0_25 = arith.constant 0 : index
    %c0_26 = arith.constant 0 : index
    %25 = vector.load %arg3[%c0_24, %c0_25, %c0_26] : memref<1x16x512xbf16, #tpu.memory_space<vmem>>, vector<1x16x512xbf16>
    %26 = vector.shape_cast %25 : vector<1x16x512xbf16> to vector<16x512xbf16>
    %27 = vector.shape_cast %24 : vector<16x512xbf16> to vector<1x16x512xbf16>
    tpu.vector_store %arg3[%c0_24, %c0_25, %c0_26], %27 {strides = array<i32>} : memref<1x16x512xbf16, #tpu.memory_space<vmem>>, vector<1x16x512xbf16>,
    %cst_27 = arith.constant dense<0.000000e+00> : vector<512xf32>
    %28 = vector.multi_reduction <add>, %23, %cst_27 [0] : vector<16x512xf32> to vector<512xf32>
    %29 = vector.shape_cast %28 : vector<512xf32> to vector<1x512xf32>
    %30 = arith.addf %4, %29 : vector<1x512xf32>
    %31 = arith.mulf %23, %23 : vector<16x512xf32>
    %cst_28 = arith.constant dense<0.000000e+00> : vector<512xf32>
    %32 = vector.multi_reduction <add>, %31, %cst_28 [0] : vector<16x512xf32> to vector<512xf32>
    %33 = vector.shape_cast %32 : vector<512xf32> to vector<1x512xf32>
    %34 = arith.addf %5, %33 : vector<1x512xf32>
    %c0_29 = arith.constant 0 : index
    %c0_30 = arith.constant 0 : index
    %c0_31 = arith.constant 0 : index
    %35 = vector.load %arg4[%c0_29, %c0_30, %c0_31] : memref<1x1x512xf32, #tpu.memory_space<vmem>>, vector<1x1x512xf32>
    %36 = vector.shape_cast %35 : vector<1x1x512xf32> to vector<1x512xf32>
    %37 = vector.shape_cast %30 : vector<1x512xf32> to vector<1x1x512xf32>
    tpu.vector_store %arg4[%c0_29, %c0_30, %c0_31], %37 {strides = array<i32>} : memref<1x1x512xf32, #tpu.memory_space<vmem>>, vector<1x1x512xf32>,
    %c0_32 = arith.constant 0 : index
    %c0_33 = arith.constant 0 : index
    %c0_34 = arith.constant 0 : index
    %38 = vector.load %arg5[%c0_32, %c0_33, %c0_34] : memref<1x1x512xf32, #tpu.memory_space<vmem>>, vector<1x1x512xf32>
    %39 = vector.shape_cast %38 : vector<1x1x512xf32> to vector<1x512xf32>
    %40 = vector.shape_cast %34 : vector<1x512xf32> to vector<1x1x512xf32>
    tpu.vector_store %arg5[%c0_32, %c0_33, %c0_34], %40 {strides = array<i32>} : memref<1x1x512xf32, #tpu.memory_space<vmem>>, vector<1x1x512xf32>,
    return
  }
  func.func @transform_0(%arg0: i32) -> (i32, i32, i32) {
    %c0_i32 = arith.constant 0 : i32
    %c0_i32_0 = arith.constant 0 : i32
    %c0_i32_1 = arith.constant 0 : i32
    return %arg0, %c0_i32, %c0_i32_0 : i32, i32, i32
  }
  func.func @transform_1(%arg0: i32) -> (i32, i32, i32) {
    %c0_i32 = arith.constant 0 : i32
    %c0_i32_0 = arith.constant 0 : i32
    %c0_i32_1 = arith.constant 0 : i32
    %c0_i32_2 = arith.constant 0 : i32
    return %c0_i32, %c0_i32_0, %c0_i32_1 : i32, i32, i32
  }
  func.func @transform_2(%arg0: i32) -> (i32, i32, i32) {
    %c0_i32 = arith.constant 0 : i32
    %c0_i32_0 = arith.constant 0 : i32
    %c0_i32_1 = arith.constant 0 : i32
    return %arg0, %c0_i32, %c0_i32_0 : i32, i32, i32
  }
  func.func @transform_3(%arg0: i32) -> (i32, i32, i32) {
    %c0_i32 = arith.constant 0 : i32
    %c0_i32_0 = arith.constant 0 : i32
    %c0_i32_1 = arith.constant 0 : i32
    return %arg0, %c0_i32, %c0_i32_0 : i32, i32, i32
  }
  func.func @transform_4(%arg0: i32) -> (i32, i32, i32) {
    %c0_i32 = arith.constant 0 : i32
    %c0_i32_0 = arith.constant 0 : i32
    %c0_i32_1 = arith.constant 0 : i32
    return %arg0, %c0_i32, %c0_i32_0 : i32, i32, i32
  }
}

module attributes {stable_mosaic.version = 11 : i64} {
  func.func @_conv_kernel(%arg0: i32, %arg1: memref<1x16x512xbf16, #tpu.memory_space<vmem>>, %arg2: memref<1x512xf32, #tpu.memory_space<vmem>>, %arg3: memref<1x512xf32, #tpu.memory_space<vmem>>, %arg4: memref<3x512x512xbf16, #tpu.memory_space<vmem>>, %arg5: memref<1x16x512xbf16, #tpu.memory_space<vmem>>, %arg6: memref<1x1x512xf32, #tpu.memory_space<vmem>>, %arg7: memref<1x1x512xf32, #tpu.memory_space<vmem>>, %arg8: memref<1x18x512xbf16, #tpu.memory_space<vmem>>) attributes {dimension_semantics = [#tpu.dimension_semantics<parallel>], iteration_bounds = array<i64: 2>, scalar_prefetch = 0 : i64, scratch_operands = 1 : i64, tpu.core_type = #tpu.core_type<tc>, window_params = [{transform_indices = @transform_0, window_bounds = array<i64: 1, 16, 512>}, {pipeline_mode = #tpu.pipeline_mode<synchronous>, transform_indices = @transform_1, window_bounds = array<i64: 1, 512>}, {pipeline_mode = #tpu.pipeline_mode<synchronous>, transform_indices = @transform_2, window_bounds = array<i64: 1, 512>}, {pipeline_mode = #tpu.pipeline_mode<synchronous>, transform_indices = @transform_3, window_bounds = array<i64: 3, 512, 512>}, {transform_indices = @transform_4, window_bounds = array<i64: 1, 16, 512>}, {transform_indices = @transform_5, window_bounds = array<i64: 1, 1, 512>}, {transform_indices = @transform_6, window_bounds = array<i64: 1, 1, 512>}]} {
    %cst = arith.constant 0.000000e+00 : bf16
    %0 = vector.broadcast %cst : bf16 to vector<1x18x512xbf16>
    %c0 = arith.constant 0 : index
    %c0_0 = arith.constant 0 : index
    %c0_1 = arith.constant 0 : index
    %1 = vector.load %arg8[%c0, %c0_0, %c0_1] : memref<1x18x512xbf16, #tpu.memory_space<vmem>>, vector<1x18x512xbf16>
    tpu.vector_store %arg8[%c0, %c0_0, %c0_1], %0 {strides = array<i32>} : memref<1x18x512xbf16, #tpu.memory_space<vmem>>, vector<1x18x512xbf16>,
    %c0_2 = arith.constant 0 : index
    %c0_3 = arith.constant 0 : index
    %c0_4 = arith.constant 0 : index
    %2 = vector.load %arg1[%c0_2, %c0_3, %c0_4] : memref<1x16x512xbf16, #tpu.memory_space<vmem>>, vector<1x16x512xbf16>
    %3 = arith.extf %2 : vector<1x16x512xbf16> to vector<1x16x512xf32>
    %c0_5 = arith.constant 0 : index
    %c0_6 = arith.constant 0 : index
    %4 = vector.load %arg2[%c0_5, %c0_6] : memref<1x512xf32, #tpu.memory_space<vmem>>, vector<1x512xf32>
    %5 = vector.shape_cast %4 : vector<1x512xf32> to vector<1x1x512xf32>
    %6 = vector.broadcast %5 : vector<1x1x512xf32> to vector<1x16x512xf32>
    %7 = arith.mulf %3, %6 : vector<1x16x512xf32>
    %c0_7 = arith.constant 0 : index
    %c0_8 = arith.constant 0 : index
    %8 = vector.load %arg3[%c0_7, %c0_8] : memref<1x512xf32, #tpu.memory_space<vmem>>, vector<1x512xf32>
    %9 = vector.shape_cast %8 : vector<1x512xf32> to vector<1x1x512xf32>
    %10 = vector.broadcast %9 : vector<1x1x512xf32> to vector<1x16x512xf32>
    %11 = arith.addf %7, %10 : vector<1x16x512xf32>
    %cst_9 = arith.constant 0.000000e+00 : f32
    %12 = vector.broadcast %cst_9 : f32 to vector<1x16x512xf32>
    %13 = arith.maximumf %11, %12 : vector<1x16x512xf32>
    %14 = arith.truncf %13 : vector<1x16x512xf32> to vector<1x16x512xbf16>
    %c0_10 = arith.constant 0 : index
    %c1 = arith.constant 1 : index
    %c0_11 = arith.constant 0 : index
    %15 = vector.load %arg8[%c0_10, %c1, %c0_11] : memref<1x18x512xbf16, #tpu.memory_space<vmem>>, vector<1x16x512xbf16>
    tpu.vector_store %arg8[%c0_10, %c1, %c0_11], %14 {strides = array<i32>} : memref<1x18x512xbf16, #tpu.memory_space<vmem>>, vector<1x16x512xbf16>,
    %cst_12 = arith.constant 0.000000e+00 : f32
    %16 = vector.broadcast %cst_12 : f32 to vector<1x512xf32>
    %cst_13 = arith.constant 0.000000e+00 : f32
    %17 = vector.broadcast %cst_13 : f32 to vector<1x512xf32>
    %c0_14 = arith.constant 0 : index
    %c0_15 = arith.constant 0 : index
    %c0_16 = arith.constant 0 : index
    %18 = vector.load %arg8[%c0_14, %c0_15, %c0_16] : memref<1x18x512xbf16, #tpu.memory_space<vmem>>, vector<1x18x512xbf16>
    %19 = vector.shape_cast %18 : vector<1x18x512xbf16> to vector<18x512xbf16>
    %cst_17 = arith.constant 0.000000e+00 : f32
    %20 = vector.broadcast %cst_17 : f32 to vector<16x512xf32>
    %21 = vector.extract_strided_slice %19 {offsets = [0, 0], sizes = [16, 512], strides = [1, 1]} : vector<18x512xbf16> to vector<16x512xbf16>
    %c0_18 = arith.constant 0 : index
    %c0_19 = arith.constant 0 : index
    %c0_20 = arith.constant 0 : index
    %22 = vector.load %arg4[%c0_18, %c0_19, %c0_20] : memref<3x512x512xbf16, #tpu.memory_space<vmem>>, vector<1x512x512xbf16>
    %23 = vector.shape_cast %22 : vector<1x512x512xbf16> to vector<512x512xbf16>
    %cst_21 = arith.constant dense<0.000000e+00> : vector<16x512xf32>
    %24 = tpu.matmul %21, %23, %cst_21 {dimension_numbers = #tpu.dot_dimension_numbers<[1], [0], [0], [1], [0, 0, 1, 1], [], []>} : vector<16x512xbf16>, vector<512x512xbf16>, vector<16x512xf32> -> vector<16x512xf32>
    %25 = arith.addf %20, %24 : vector<16x512xf32>
    %26 = vector.extract_strided_slice %19 {offsets = [1, 0], sizes = [16, 512], strides = [1, 1]} : vector<18x512xbf16> to vector<16x512xbf16>
    %c1_22 = arith.constant 1 : index
    %c0_23 = arith.constant 0 : index
    %c0_24 = arith.constant 0 : index
    %27 = vector.load %arg4[%c1_22, %c0_23, %c0_24] : memref<3x512x512xbf16, #tpu.memory_space<vmem>>, vector<1x512x512xbf16>
    %28 = vector.shape_cast %27 : vector<1x512x512xbf16> to vector<512x512xbf16>
    %cst_25 = arith.constant dense<0.000000e+00> : vector<16x512xf32>
    %29 = tpu.matmul %26, %28, %cst_25 {dimension_numbers = #tpu.dot_dimension_numbers<[1], [0], [0], [1], [0, 0, 1, 1], [], []>} : vector<16x512xbf16>, vector<512x512xbf16>, vector<16x512xf32> -> vector<16x512xf32>
    %30 = arith.addf %25, %29 : vector<16x512xf32>
    %31 = vector.extract_strided_slice %19 {offsets = [2, 0], sizes = [16, 512], strides = [1, 1]} : vector<18x512xbf16> to vector<16x512xbf16>
    %c2 = arith.constant 2 : index
    %c0_26 = arith.constant 0 : index
    %c0_27 = arith.constant 0 : index
    %32 = vector.load %arg4[%c2, %c0_26, %c0_27] : memref<3x512x512xbf16, #tpu.memory_space<vmem>>, vector<1x512x512xbf16>
    %33 = vector.shape_cast %32 : vector<1x512x512xbf16> to vector<512x512xbf16>
    %cst_28 = arith.constant dense<0.000000e+00> : vector<16x512xf32>
    %34 = tpu.matmul %31, %33, %cst_28 {dimension_numbers = #tpu.dot_dimension_numbers<[1], [0], [0], [1], [0, 0, 1, 1], [], []>} : vector<16x512xbf16>, vector<512x512xbf16>, vector<16x512xf32> -> vector<16x512xf32>
    %35 = arith.addf %30, %34 : vector<16x512xf32>
    %36 = arith.truncf %35 : vector<16x512xf32> to vector<16x512xbf16>
    %c0_29 = arith.constant 0 : index
    %c0_30 = arith.constant 0 : index
    %c0_31 = arith.constant 0 : index
    %37 = vector.load %arg5[%c0_29, %c0_30, %c0_31] : memref<1x16x512xbf16, #tpu.memory_space<vmem>>, vector<1x16x512xbf16>
    %38 = vector.shape_cast %37 : vector<1x16x512xbf16> to vector<16x512xbf16>
    %39 = vector.shape_cast %36 : vector<16x512xbf16> to vector<1x16x512xbf16>
    tpu.vector_store %arg5[%c0_29, %c0_30, %c0_31], %39 {strides = array<i32>} : memref<1x16x512xbf16, #tpu.memory_space<vmem>>, vector<1x16x512xbf16>,
    %cst_32 = arith.constant dense<0.000000e+00> : vector<512xf32>
    %40 = vector.multi_reduction <add>, %35, %cst_32 [0] : vector<16x512xf32> to vector<512xf32>
    %41 = vector.shape_cast %40 : vector<512xf32> to vector<1x512xf32>
    %42 = arith.addf %16, %41 : vector<1x512xf32>
    %43 = arith.mulf %35, %35 : vector<16x512xf32>
    %cst_33 = arith.constant dense<0.000000e+00> : vector<512xf32>
    %44 = vector.multi_reduction <add>, %43, %cst_33 [0] : vector<16x512xf32> to vector<512xf32>
    %45 = vector.shape_cast %44 : vector<512xf32> to vector<1x512xf32>
    %46 = arith.addf %17, %45 : vector<1x512xf32>
    %c0_34 = arith.constant 0 : index
    %c0_35 = arith.constant 0 : index
    %c0_36 = arith.constant 0 : index
    %47 = vector.load %arg6[%c0_34, %c0_35, %c0_36] : memref<1x1x512xf32, #tpu.memory_space<vmem>>, vector<1x1x512xf32>
    %48 = vector.shape_cast %47 : vector<1x1x512xf32> to vector<1x512xf32>
    %49 = vector.shape_cast %42 : vector<1x512xf32> to vector<1x1x512xf32>
    tpu.vector_store %arg6[%c0_34, %c0_35, %c0_36], %49 {strides = array<i32>} : memref<1x1x512xf32, #tpu.memory_space<vmem>>, vector<1x1x512xf32>,
    %c0_37 = arith.constant 0 : index
    %c0_38 = arith.constant 0 : index
    %c0_39 = arith.constant 0 : index
    %50 = vector.load %arg7[%c0_37, %c0_38, %c0_39] : memref<1x1x512xf32, #tpu.memory_space<vmem>>, vector<1x1x512xf32>
    %51 = vector.shape_cast %50 : vector<1x1x512xf32> to vector<1x512xf32>
    %52 = vector.shape_cast %46 : vector<1x512xf32> to vector<1x1x512xf32>
    tpu.vector_store %arg7[%c0_37, %c0_38, %c0_39], %52 {strides = array<i32>} : memref<1x1x512xf32, #tpu.memory_space<vmem>>, vector<1x1x512xf32>,
    return
  }
  func.func @transform_0(%arg0: i32) -> (i32, i32, i32) {
    %c0_i32 = arith.constant 0 : i32
    %c0_i32_0 = arith.constant 0 : i32
    %c0_i32_1 = arith.constant 0 : i32
    return %arg0, %c0_i32, %c0_i32_0 : i32, i32, i32
  }
  func.func @transform_1(%arg0: i32) -> (i32, i32) {
    %c0_i32 = arith.constant 0 : i32
    %c0_i32_0 = arith.constant 0 : i32
    %c0_i32_1 = arith.constant 0 : i32
    return %c0_i32, %c0_i32_0 : i32, i32
  }
  func.func @transform_2(%arg0: i32) -> (i32, i32) {
    %c0_i32 = arith.constant 0 : i32
    %c0_i32_0 = arith.constant 0 : i32
    %c0_i32_1 = arith.constant 0 : i32
    return %c0_i32, %c0_i32_0 : i32, i32
  }
  func.func @transform_3(%arg0: i32) -> (i32, i32, i32) {
    %c0_i32 = arith.constant 0 : i32
    %c0_i32_0 = arith.constant 0 : i32
    %c0_i32_1 = arith.constant 0 : i32
    %c0_i32_2 = arith.constant 0 : i32
    return %c0_i32, %c0_i32_0, %c0_i32_1 : i32, i32, i32
  }
  func.func @transform_4(%arg0: i32) -> (i32, i32, i32) {
    %c0_i32 = arith.constant 0 : i32
    %c0_i32_0 = arith.constant 0 : i32
    %c0_i32_1 = arith.constant 0 : i32
    return %arg0, %c0_i32, %c0_i32_0 : i32, i32, i32
  }
  func.func @transform_5(%arg0: i32) -> (i32, i32, i32) {
    %c0_i32 = arith.constant 0 : i32
    %c0_i32_0 = arith.constant 0 : i32
    %c0_i32_1 = arith.constant 0 : i32
    return %arg0, %c0_i32, %c0_i32_0 : i32, i32, i32
  }
  func.func @transform_6(%arg0: i32) -> (i32, i32, i32) {
    %c0_i32 = arith.constant 0 : i32
    %c0_i32_0 = arith.constant 0 : i32
    %c0_i32_1 = arith.constant 0 : i32
    return %arg0, %c0_i32, %c0_i32_0 : i32, i32, i32
  }
}

module attributes {stable_mosaic.version = 11 : i64} {
  func.func @_bn_relu_kernel(%arg0: i32, %arg1: memref<1x16x512xbf16, #tpu.memory_space<vmem>>, %arg2: memref<1x512xf32, #tpu.memory_space<vmem>>, %arg3: memref<1x512xf32, #tpu.memory_space<vmem>>, %arg4: memref<1x16x512xf32, #tpu.memory_space<vmem>>) attributes {dimension_semantics = [#tpu.dimension_semantics<parallel>], iteration_bounds = array<i64: 2>, scalar_prefetch = 0 : i64, scratch_operands = 0 : i64, tpu.core_type = #tpu.core_type<tc>, window_params = [{transform_indices = @transform_0, window_bounds = array<i64: 1, 16, 512>}, {pipeline_mode = #tpu.pipeline_mode<synchronous>, transform_indices = @transform_1, window_bounds = array<i64: 1, 512>}, {pipeline_mode = #tpu.pipeline_mode<synchronous>, transform_indices = @transform_2, window_bounds = array<i64: 1, 512>}, {transform_indices = @transform_3, window_bounds = array<i64: 1, 16, 512>}]} {
    %c0 = arith.constant 0 : index
    %c0_0 = arith.constant 0 : index
    %c0_1 = arith.constant 0 : index
    %0 = vector.load %arg1[%c0, %c0_0, %c0_1] : memref<1x16x512xbf16, #tpu.memory_space<vmem>>, vector<1x16x512xbf16>
    %1 = arith.extf %0 : vector<1x16x512xbf16> to vector<1x16x512xf32>
    %c0_2 = arith.constant 0 : index
    %c0_3 = arith.constant 0 : index
    %2 = vector.load %arg2[%c0_2, %c0_3] : memref<1x512xf32, #tpu.memory_space<vmem>>, vector<1x512xf32>
    %3 = vector.shape_cast %2 : vector<1x512xf32> to vector<1x1x512xf32>
    %4 = vector.broadcast %3 : vector<1x1x512xf32> to vector<1x16x512xf32>
    %5 = arith.mulf %1, %4 : vector<1x16x512xf32>
    %c0_4 = arith.constant 0 : index
    %c0_5 = arith.constant 0 : index
    %6 = vector.load %arg3[%c0_4, %c0_5] : memref<1x512xf32, #tpu.memory_space<vmem>>, vector<1x512xf32>
    %7 = vector.shape_cast %6 : vector<1x512xf32> to vector<1x1x512xf32>
    %8 = vector.broadcast %7 : vector<1x1x512xf32> to vector<1x16x512xf32>
    %9 = arith.addf %5, %8 : vector<1x16x512xf32>
    %cst = arith.constant 0.000000e+00 : f32
    %10 = vector.broadcast %cst : f32 to vector<1x16x512xf32>
    %11 = arith.maximumf %9, %10 : vector<1x16x512xf32>
    %c0_6 = arith.constant 0 : index
    %c0_7 = arith.constant 0 : index
    %c0_8 = arith.constant 0 : index
    %12 = vector.load %arg4[%c0_6, %c0_7, %c0_8] : memref<1x16x512xf32, #tpu.memory_space<vmem>>, vector<1x16x512xf32>
    tpu.vector_store %arg4[%c0_6, %c0_7, %c0_8], %11 {strides = array<i32>} : memref<1x16x512xf32, #tpu.memory_space<vmem>>, vector<1x16x512xf32>,
    return
  }
  func.func @transform_0(%arg0: i32) -> (i32, i32, i32) {
    %c0_i32 = arith.constant 0 : i32
    %c0_i32_0 = arith.constant 0 : i32
    %c0_i32_1 = arith.constant 0 : i32
    return %arg0, %c0_i32, %c0_i32_0 : i32, i32, i32
  }
  func.func @transform_1(%arg0: i32) -> (i32, i32) {
    %c0_i32 = arith.constant 0 : i32
    %c0_i32_0 = arith.constant 0 : i32
    %c0_i32_1 = arith.constant 0 : i32
    return %c0_i32, %c0_i32_0 : i32, i32
  }
  func.func @transform_2(%arg0: i32) -> (i32, i32) {
    %c0_i32 = arith.constant 0 : i32
    %c0_i32_0 = arith.constant 0 : i32
    %c0_i32_1 = arith.constant 0 : i32
    return %c0_i32, %c0_i32_0 : i32, i32
  }
  func.func @transform_3(%arg0: i32) -> (i32, i32, i32) {
    %c0_i32 = arith.constant 0 : i32
    %c0_i32_0 = arith.constant 0 : i32
    %c0_i32_1 = arith.constant 0 : i32
    return %arg0, %c0_i32, %c0_i32_0 : i32, i32, i32
  }
}

</mosaic_0001>

<bundles_post_ra>
// kernel: tile.23
= control target key start
LH: loop header
LB: loop body
LE: loop exit
PB: predicated region body
PF: predicated region fallthrough
CT: control target
= control target key end

     0   :  { %s28_s0 = inlined_call_operand.vmem [shape: f32[32], index: 0, kind: input, shape index: {}]   ;;  %s29_s1 = inlined_call_operand.vmem [shape: f32[16,32], index: 1, kind: output, shape index: {}]  }
   0x1   :  { %v4_v0 = vld [vmem:[%s28_s0] ss:$0 sm:$0xff] }
   0x2   :  { %5 = vst [vmem:[%s29_s1] sm:$0xff] %v4_v0  ;;  %8 = vst [vmem:[%s29_s1 + $0x8] sm:$0xff] %v4_v0 }

// kernel: tile.24
= control target key start
LH: loop header
LB: loop body
LE: loop exit
PB: predicated region body
PF: predicated region fallthrough
CT: control target
= control target key end

     0   :  { %s57_s8 = smov 96   ;;  %vm3_vm0 = vcmask 261120   ;;  %s59_s15 = smov 64   ;;  %vm9_vm1 = vcmask 1048320   ;;  %vm15_vm2 = vcmask 785920   ;;  %vm21_vm3 = vcmask 523520   ;;  %s94_s0 = inlined_call_operand.vmem [shape: f32[16,32], index: 0, kind: input, shape index: {}]   ;;  %s95_s1 = inlined_call_operand.vmem [shape: f32[1,512], index: 1, kind: output, shape index: {}]  }
   0x1   :  { %v48_v0 = vld [vmem:[%s94_s0 + $0x3] ss:$4 sm:$0xf]   ;;  %v49_v1 = vld [vmem:[%s94_s0 + $0x2] ss:$4 sm:$0xf]  }
   0x2   :  { %7 = vrot.lane.b32.xlu0 %v48_v0, %s57_s8  ;;  %v50_v2 = vld [vmem:[%s94_s0 + $0x1] ss:$4 sm:$0xf]   ;;  %v2_v3 = vld [vmem:[%s94_s0] ss:$4 sm:$0xf]  }
   0x3   :  { %s58_s0 = smov 32   ;;  %4 = vst.msk [vmem:[#allocation0] ss:$8 sm:$0xf] %vm3_vm0, %v2_v3  }
   0x4   :  { %19 = vrot.lane.b32.xlu1 %v50_v2, %s58_s0 }
   0x6   :  { %13 = vrot.lane.b32.xlu0 %v49_v1, %s59_s15 }
  0x74   :  { %v8_v4 = vpop.permute.xlu0 %7  }
  0x75   :  { %10 = vst.msk [vmem:[#allocation0] ss:$8 sm:$0xf] %vm9_vm1, %v8_v4  }
  0x76   :  { %v20_v5 = vpop.permute.xlu1 %19  }
  0x78   :  { %v14_v6 = vpop.permute.xlu0 %13  }
  0x79   :  { %16 = vst.msk [vmem:[#allocation0] ss:$8 sm:$0xf] %vm15_vm2, %v14_v6  }
  0x7a   :  { %22 = vst.msk [vmem:[#allocation0] ss:$8 sm:$0xf] %vm21_vm3, %v20_v5  }
  0x81   :  { %v26_v7 = vld [vmem:[#allocation0] sm:$0x1]  ;;  %v30_v8 = vld [vmem:[#allocation0 + $0x8] sm:$0x1]  ;;  %v35_v9 = vld [vmem:[#allocation0 + $0x10] sm:$0x1] }
  0x82   :  { %28 = vst [vmem:[%s95_s1] sm:$0x1] %v26_v7  ;;  %51 = vst [vmem:[%s95_s1 + $0x1] sm:$0x1] %v30_v8  ;;  %v41_v10 = vld [vmem:[#allocation0 + $0x18] sm:$0x1] }
  0x83   :  { %52 = vst [vmem:[%s95_s1 + $0x2] sm:$0x1] %v35_v9  ;;  %53 = vst [vmem:[%s95_s1 + $0x3] sm:$0x1] %v41_v10 }

// kernel: conv_block.3
= control target key start
LH: loop header
LB: loop body
LE: loop exit
PB: predicated region body
PF: predicated region fallthrough
CT: control target
= control target key end

     0   :  { %s1382_s15 = smov 0   ;;  %s1610_s0 = inlined_call_operand.vmem [shape: bf16[2,16,64], index: 0, kind: input, shape index: {}]   ;;  %s1611_s1 = inlined_call_operand.vmem [shape: bf16[3,64,512], index: 1, kind: input, shape index: {}]   ;;  %s1612_s2 = inlined_call_operand.vmem [shape: bf16[2,16,512], index: 2, kind: output, shape index: {0}]   ;;  %s1613_s3 = inlined_call_operand.vmem [shape: f32[2,1,512], index: 3, kind: output, shape index: {1}]   ;;  %s1614_s4 = inlined_call_operand.vmem [shape: f32[2,1,512], index: 4, kind: output, shape index: {2}]  }
   0x1 LB: > { %s1136_s16 = sadd.s32 4294967295, %s1353_s15   ;;  %p1140_p0 = scmp.ge.s32.totalorder %s1353_s15, 1  ;;  %s1353_s15 = sphi %s1382_s15, %s15_s15  }
   0x2   : > { %p167_p1 = scmp.lt.s32.totalorder %s1353_s15, 3 }
   0x4   : > { %p168_p2 = pnand %p1140_p0, %p167_p1 }
   0x5   : > { %v1273_v0 = vld [vmem:[%s1611_s1 + $0x84] ss:$16 sps:$4 sm:$0xff] (!%p168_p2)   ;;  %p201_p3 = scmp.lt.s32.totalorder (!%p168_p2), %s1136_s16, 1  ;;  %vm220_vm0 = vcmask (!%p168_p2), 519168   ;;  %v1275_v1 = vld [vmem:[%s1611_s1 + $0x8c] ss:$16 sps:$4 sm:$0xff] (!%p168_p2)  }
   0x6   : > { %171 = sbr.rel (%p168_p2) target bundleno = 314 (0x13a), region = 28  ;;  %vm223_vm1 = vcmask (!%p168_p2), 516096   ;;  %403 = vmatprep.subr.bf16.mxu0 (!%p168_p2), %v1273_v0  ;;  %v1277_v2 = vld [vmem:[%s1611_s1 + $0x80] ss:$16 sps:$4 sm:$0xff] (!%p168_p2)   ;;  %v1278_v3 = vld [vmem:[%s1611_s1 + $0x88] ss:$16 sps:$4 sm:$0xff] (!%p168_p2)   ;;  %446 = vmatprep.subr.bf16.mxu1 (!%p168_p2), %v1275_v1 }
   0x7   : > { %v1355_v4 = vmov (!%p168_p2), 0   ;;  %v1279_v5 = vld [vmem:[%s1611_s1 + $0xa4] ss:$16 sps:$4 sm:$0xff] (!%p168_p2)   ;;  %404 = vmatpush1.bf16.msra.mxu0 (!%p168_p2), %v1277_v2  ;;  %447 = vmatpush1.bf16.msra.mxu1 (!%p168_p2), %v1278_v3  ;;  %v1281_v6 = vld [vmem:[%s1611_s1 + $0xac] ss:$16 sps:$4 sm:$0xff] (!%p168_p2)   ;;  %vm399_vm9 = vcmask (!%p168_p2), 523264  }
   0x8   : > { %221 = vst.msk [vmem:[#allocation2] sm:$0xf] (!%p168_p2), %vm220_vm0, %v1355_v4  ;;  %222 = vst.msk [vmem:[#allocation2 + $0x4] sm:$0xf] (!%p168_p2), %vm220_vm0, %v1355_v4  ;;  %435 = vmatprep.mubr.bf16.mxu0 (!%p168_p2), %v1355_v4  ;;  %478 = vmatprep.mubr.bf16.mxu1 (!%p168_p2), %v1355_v4  ;;  %v1283_v7 = vld [vmem:[%s1611_s1 + $0xa0] ss:$16 sps:$4 sm:$0xff] (!%p168_p2)  }
   0x9   : > { %224 = vst.msk [vmem:[#allocation2 + $0x8] sm:$0x1] (!%p168_p2), %vm223_vm1, %v1355_v4  ;;  %405 = vmatprep.subr.bf16.mxu0 (!%p168_p2), %v1279_v5  ;;  %v1284_v8 = vld [vmem:[%s1611_s1 + $0xa8] ss:$16 sps:$4 sm:$0xff] (!%p168_p2)   ;;  %448 = vmatprep.subr.bf16.mxu1 (!%p168_p2), %v1281_v6  ;;  %v1285_v9 = vld [vmem:[%s1611_s1 + $0xc4] ss:$16 sps:$4 sm:$0xff] (!%p168_p2)  }
   0xa   : > { %v1287_v10 = vld [vmem:[%s1611_s1 + $0xcc] ss:$16 sps:$4 sm:$0xff] (!%p168_p2)   ;;  %v1289_v11 = vld [vmem:[%s1611_s1 + $0xc0] ss:$16 sps:$4 sm:$0xff] (!%p168_p2)   ;;  %v1290_v12 = vld [vmem:[%s1611_s1 + $0xc8] ss:$16 sps:$4 sm:$0xff] (!%p168_p2)  }
   0xb   : > { %406 = vmatpush1.bf16.msra.mxu0 (!%p168_p2), %v1283_v7  ;;  %449 = vmatpush1.bf16.msra.mxu1 (!%p168_p2), %v1284_v8  ;;  %v1291_v13 = vld [vmem:[%s1611_s1 + $0xe4] ss:$16 sps:$4 sm:$0xff] (!%p168_p2)   ;;  %vm227_vm2 = vsmask.f32 (!%p168_p2), 256  ;;  %v1293_v14 = vld [vmem:[%s1611_s1 + $0xec] ss:$16 sps:$4 sm:$0xff] (!%p168_p2)  }
   0xc   : > { %407 = vmatprep.subr.bf16.mxu0 (!%p168_p2), %v1285_v9  ;;  %450 = vmatprep.subr.bf16.mxu1 (!%p168_p2), %v1287_v10  ;;  %vm228_vm3 = vsmask.f32 (!%p168_p2), 4368  ;;  %v1295_v15 = vld [vmem:[%s1611_s1 + $0xe0] ss:$16 sps:$4 sm:$0xff] (!%p168_p2)   ;;  %vm251_vm4 = vsmask.f32 (!%p168_p2), 7938  ;;  %vm258_vm7 = vmand (!%p168_p2), %vm223_vm1, %vm227_vm2 }
   0xd   : > { %s1620_s16 = smov (!%p201_p3, %s1136_s16), 1  ;;  %v1296_v17 = vld [vmem:[%s1611_s1 + $0xe8] ss:$16 sps:$4 sm:$0xff]   ;;  %vm1453_vm5 = vmor %vm227_vm2, %vm228_vm3  ;;  %v1299_v29 = vld [vmem:[%s1611_s1 + $0x4] ss:$16 sps:$4 sm:$0xff]   ;;  %vm674_vm10 = vcmask 1046528  }
   0xe   : > { %s1241_s5 = sshll.u32 %s1620_s16, 3  ;;  %vm1458_vm6 = vmand %vm220_vm0, %vm251_vm4  ;;  %v1302_v32 = vld [vmem:[%s1611_s1 + $0xc] ss:$16 sps:$4 sm:$0xff]   ;;  %vm306_vm8 = vsmask.f32 7424  ;;  %s1242_s21 = sshll.u32 %s1620_s16, 5 }
   0xf   : > { %s205_s20 = scalar_lea.vmem %s1610_s0, %s1241_s5  ;;  %408 = vmatpush1.bf16.msra.mxu0 %v1289_v11  ;;  %451 = vmatpush1.bf16.msra.mxu1 %v1290_v12  ;;  %v253_v24 = vld [vmem:[#allocation2] sm:$0xf]  ;;  %v1300_v45 = vld [vmem:[%s1611_s1 + $0x8] ss:$16 sps:$4 sm:$0xff]   ;;  %v1307_v48 = vld [vmem:[%s1611_s1 + $0x24] ss:$16 sps:$4 sm:$0xff]   ;;  %s210_s24 = scalar_lea.vmem %s1612_s2, %s1242_s21 }
  0x10   : > { %v225_v16 = vld [vmem:[%s205_s20] sm:$0xf]  ;;  %v226_v18 = vld [vmem:[%s205_s20 + $0x4] sm:$0xf]  ;;  %409 = vmatprep.subr.bf16.mxu0 %v1291_v13  ;;  %452 = vmatprep.subr.bf16.mxu1 %v1293_v14  ;;  %v259_v27 = vld [vmem:[#allocation2 + $0x8] sm:$0x1] }
  0x11   : > { %v231_v19 = vshrl.u32 %v225_v16, 16  ;;  %v234_v20 = vshll.u32 %v225_v16, 16  ;;  %v239_v22 = vshrl.u32 %v226_v18, 16  ;;  %v242_v23 = vshll.u32 %v226_v18, 16  ;;  %v1297_v44 = vld [vmem:[%s1611_s1] ss:$16 sps:$4 sm:$0xff]  }
  0x12   : > { %v1310_v49 = vld [vmem:[%s1611_s1 + $0x2c] ss:$16 sps:$4 sm:$0xff]   ;;  %v1305_v51 = vld [vmem:[%s1611_s1 + $0x20] ss:$16 sps:$4 sm:$0xff]   ;;  %v1308_v52 = vld [vmem:[%s1611_s1 + $0x28] ss:$16 sps:$4 sm:$0xff]   ;;  %v964_v18 = vlaneseq }
  0x13   : > { %v233_v25 = vrot.slane %v231_v19, 7  ;;  %v241_v28 = vrot.slane %v239_v22, 7  ;;  %410 = vmatpush1.bf16.msra.mxu0 %v1295_v15  ;;  %453 = vmatpush1.bf16.msra.mxu1 %v1296_v17  ;;  %v1313_v53 = vld [vmem:[%s1611_s1 + $0x44] ss:$16 sps:$4 sm:$0xff]   ;;  %v1316_v54 = vld [vmem:[%s1611_s1 + $0x4c] ss:$16 sps:$4 sm:$0xff]  }
  0x14   : > { %571 = vmatprep.subr.bf16.mxu0 %v1299_v29  ;;  %614 = vmatprep.subr.bf16.mxu1 %v1302_v32  ;;  %v1311_v55 = vld [vmem:[%s1611_s1 + $0x40] ss:$16 sps:$4 sm:$0xff]   ;;  %v1314_v56 = vld [vmem:[%s1611_s1 + $0x48] ss:$16 sps:$4 sm:$0xff]   ;;  %v1319_v57 = vld [vmem:[%s1611_s1 + $0x64] ss:$16 sps:$4 sm:$0xff]  }
  0x15   : > { %v236_v30 = vor.u32 %v234_v20, %v233_v25  ;;  %v237_v31 = vrot.slane %v233_v25, 4  ;;  %v244_v33 = vor.u32 %v242_v23, %v241_v28  ;;  %v246_v34 = vrot.slane %v241_v28, 4  ;;  %v1322_v58 = vld [vmem:[%s1611_s1 + $0x6c] ss:$16 sps:$4 sm:$0xff]   ;;  %v1317_v59 = vld [vmem:[%s1611_s1 + $0x60] ss:$16 sps:$4 sm:$0xff]  }
  0x16   : > { %v1320_v60 = vld [vmem:[%s1611_s1 + $0x68] ss:$16 sps:$4 sm:$0xff]   ;;  %v1325_v61 = vld [vmem:[%s1611_s1 + $0x104] ss:$16 sps:$4 sm:$0xff]   ;;  %v1328_v62 = vld [vmem:[%s1611_s1 + $0x10c] ss:$16 sps:$4 sm:$0xff]  }
  0x17   : > { %v254_v35 = vsel %vm1458_vm6, %v236_v30, %v253_v24  ;;  %v245_v36 = vsel %vm1453_vm5, %v237_v31, %v244_v33  ;;  %v260_v37 = vsel %vm258_vm7, %v246_v34, %v259_v27  ;;  %v1323_v63 = vld [vmem:[%s1611_s1 + $0x100] ss:$16 sps:$4 sm:$0xff]   ;;  %v1326_v0 = vld [vmem:[%s1611_s1 + $0x108] ss:$16 sps:$4 sm:$0xff]   ;;  %v1331_v1 = vld [vmem:[%s1611_s1 + $0x124] ss:$16 sps:$4 sm:$0xff]  }
  0x18   : > { %255 = vst [vmem:[#allocation2] sm:$0xf] %v254_v35  ;;  %256 = vst.msk [vmem:[#allocation2 + $0x4] sm:$0xf] %vm220_vm0, %v245_v36  ;;  %v1334_v2 = vld [vmem:[%s1611_s1 + $0x12c] ss:$16 sps:$4 sm:$0xff]  }
  0x19   : > { %261 = vst [vmem:[#allocation2 + $0x8] sm:$0x1] %v260_v37  ;;  %v1329_v3 = vld [vmem:[%s1611_s1 + $0x120] ss:$16 sps:$4 sm:$0xff]   ;;  %v1332_v5 = vld [vmem:[%s1611_s1 + $0x128] ss:$16 sps:$4 sm:$0xff]  }
  0x1a   : > { %v1337_v6 = vld [vmem:[%s1611_s1 + $0x144] ss:$16 sps:$4 sm:$0xff]   ;;  %v1340_v7 = vld [vmem:[%s1611_s1 + $0x14c] ss:$16 sps:$4 sm:$0xff]   ;;  %v1335_v8 = vld [vmem:[%s1611_s1 + $0x140] ss:$16 sps:$4 sm:$0xff]  }
  0x1b   : > { %v1338_v9 = vld [vmem:[%s1611_s1 + $0x148] ss:$16 sps:$4 sm:$0xff]   ;;  %v1343_v10 = vld [vmem:[%s1611_s1 + $0x164] ss:$16 sps:$4 sm:$0xff]   ;;  %v1341_v11 = vld [vmem:[%s1611_s1 + $0x160] ss:$16 sps:$4 sm:$0xff]  }
  0x1c   : > { %v1344_v12 = vld [vmem:[%s1611_s1 + $0x168] ss:$16 sps:$4 sm:$0xff]   ;;  %v1356_v16 = vmov 1966171168   ;;  %v965_v20 = vshrl.u32 %v964_v18, 7  ;;  %s1145_s25 = sshll.u32 %s1620_s16, 2 }
  0x1d   : > { %v962_v17 = vunpack.c.l.s4 %v1356_v16  ;;  %s214_s28 = scalar_lea.vmem %s1613_s3, %s1145_s25  ;;  %vm986_vm11 = vcmp.lt.s32.totalorder %v964_v18, 512  ;;  %s218_s5 = scalar_lea.vmem %s1614_s4, %s1145_s25 }
  0x1f   : > { %v1475_v38 = vld [vmem:[#allocation2] sm:$0xff]   ;;  %v963_v19 = vunpack.c.0.s8 %v962_v17 }
  0x20   : > { %v1477_v39 = vld [vmem:[#allocation2 + $0x8] ss:$0 sps:$4 sm:$0x11]   ;;  %v308_v40 = vshrl.u32 %v1475_v38, 16  ;;  %v310_v41 = vshll.u32 %v1475_v38, 16  ;;  %v675_v13 = vrot.slane %v1475_v38, 1 }
  0x21   : > { %v315_v42 = vshll.u32 %v1477_v39, 16  ;;  %v676_v14 = vrot.slane %v1477_v39, 1  ;;  %v1591_v27 = vsub.s32 %v963_v19, %v965_v20 }
  0x22   : > { %v312_v43 = vrot.slane %v310_v41, 1 }
  0x23   : > { %v317_v46 = vrot.slane %v315_v42, 1  ;;  %v677_v15 = vsel %vm674_vm10, %v675_v13, %v676_v14 }
  0x24   : > { %v313_v47 = vor.u32 %v312_v43, %v308_v40 }
  0x26   : > { %v318_v50 = vsel %vm306_vm8, %v313_v47, %v317_v46 }
  0x27   : > { %1181 = vmatmul.mubr.msk.bf16.vlgmr.msra.gmra.mrb[0].mxu0 %vm399_vm9, %v318_v50  ;;  %1182 = vmatmul.mubr.msk.bf16.vlgmr.msra.gmra.mrb[0].mxu1 %vm399_vm9, %v318_v50 }
  0x28   : > { %572 = vmatpush1.bf16.msra.mxu0 %v1297_v44  ;;  %615 = vmatpush1.bf16.msra.mxu1 %v1300_v45 }
  0x29   : > { %573 = vmatprep.subr.bf16.mxu0 %v1307_v48  ;;  %616 = vmatprep.subr.bf16.mxu1 %v1310_v49 }
  0x2a   : > { %603 = vmatprep.mubr.bf16.mxu0 %v1355_v4  ;;  %646 = vmatprep.mubr.bf16.mxu1 %v1355_v4 }
  0x2c   : > { %574 = vmatpush1.bf16.msra.mxu0 %v1305_v51  ;;  %617 = vmatpush1.bf16.msra.mxu1 %v1308_v52 }
  0x2d   : > { %575 = vmatprep.subr.bf16.mxu0 %v1313_v53  ;;  %618 = vmatprep.subr.bf16.mxu1 %v1316_v54 }
  0x30   : > { %576 = vmatpush1.bf16.msra.mxu0 %v1311_v55  ;;  %619 = vmatpush1.bf16.msra.mxu1 %v1314_v56 }
  0x31   : > { %577 = vmatprep.subr.bf16.mxu0 %v1319_v57  ;;  %620 = vmatprep.subr.bf16.mxu1 %v1322_v58 }
  0x34   : > { %578 = vmatpush1.bf16.msra.mxu0 %v1317_v59  ;;  %621 = vmatpush1.bf16.msra.mxu1 %v1320_v60 }
  0x35   : > { %761 = vmatprep.subr.bf16.mxu0 %v1325_v61  ;;  %804 = vmatprep.subr.bf16.mxu1 %v1328_v62 }
  0x37   : > { %1199 = vmatmul.mubr.msk.bf16.vlgmr.msra.gmra.mrb[0].mxu0 %vm399_vm9, %v1475_v38  ;;  %1200 = vmatmul.mubr.msk.bf16.vlgmr.msra.gmra.mrb[0].mxu1 %vm399_vm9, %v1475_v38 }
  0x38   : > { %762 = vmatpush1.bf16.msra.mxu0 %v1323_v63  ;;  %805 = vmatpush1.bf16.msra.mxu1 %v1326_v0 }
  0x39   : > { %763 = vmatprep.subr.bf16.mxu0 %v1331_v1  ;;  %806 = vmatprep.subr.bf16.mxu1 %v1334_v2 }
  0x3a   : > { %793 = vmatprep.mubr.bf16.mxu0 %v1355_v4  ;;  %836 = vmatprep.mubr.bf16.mxu1 %v1355_v4  ;;  %v1346_v4 = vld [vmem:[%s1611_s1 + $0x16c] ss:$16 sps:$4 sm:$0xff]  }
  0x3c   : > { %764 = vmatpush1.bf16.msra.mxu0 %v1329_v3  ;;  %807 = vmatpush1.bf16.msra.mxu1 %v1332_v5 }
  0x3d   : > { %765 = vmatprep.subr.bf16.mxu0 %v1337_v6  ;;  %808 = vmatprep.subr.bf16.mxu1 %v1340_v7 }
  0x40   : > { %766 = vmatpush1.bf16.msra.mxu0 %v1335_v8  ;;  %809 = vmatpush1.bf16.msra.mxu1 %v1338_v9 }
  0x41   : > { %767 = vmatprep.subr.bf16.mxu0 %v1343_v10  ;;  %810 = vmatprep.subr.bf16.mxu1 %v1346_v4 }
  0x44   : > { %768 = vmatpush1.bf16.msra.mxu0 %v1341_v11  ;;  %811 = vmatpush1.bf16.msra.mxu1 %v1344_v12 }
  0x47   : > { %1233 = vmatmul.mubr.msk.bf16.vlgmr.msra.gmra.mrb[0].mxu0 %vm399_vm9, %v677_v15  ;;  %1234 = vmatmul.mubr.msk.bf16.vlgmr.msra.gmra.mrb[0].mxu1 %vm399_vm9, %v677_v15 }
 0x11a   : > { %v795_v21 = vpop.f32.mrb[0].mxu0  ;;  %v838_v22 = vpop.f32.mrb[0].mxu1 }
 0x11b   : > { %v915_v23 = vmul.f32 %v795_v21, %v795_v21  ;;  %v917_v24 = vmul.f32 %v838_v22, %v838_v22  ;;  %v797_v25 = vpop.f32.mrb[1].mxu0  ;;  %v840_v26 = vpop.f32.mrb[1].mxu1 }
 0x11c   : > { %v1243_v28 = vpack.c.bf16 %v797_v25, %v795_v21  ;;  %v916_v29 = vmul.f32 %v797_v25, %v797_v25  ;;  %v1244_v30 = vpack.c.bf16 %v840_v26, %v838_v22  ;;  %v918_v31 = vmul.f32 %v840_v26, %v840_v26  ;;  %v799_v32 = vpop.f32.mrb[2].mxu0  ;;  %v842_v33 = vpop.f32.mrb[2].mxu1 }
 0x11d   : > { %v883_v34 = vadd.f32 %v799_v32, %v795_v21  ;;  %v919_v35 = vmul.f32 %v799_v32, %v799_v32  ;;  %v897_v36 = vadd.f32 %v842_v33, %v838_v22  ;;  %v921_v37 = vmul.f32 %v842_v33, %v842_v33  ;;  %v801_v38 = vpop.f32.mrb[3].mxu0  ;;  %v844_v39 = vpop.f32.mrb[3].mxu1 }
 0x11e   : > { %879 = vst [vmem:[%s210_s24] sm:$0xff] %v1243_v28  ;;  %880 = vst [vmem:[%s210_s24 + $0x8] sm:$0xff] %v1244_v30  ;;  %v1245_v40 = vpack.c.bf16 %v801_v38, %v799_v32  ;;  %v890_v41 = vadd.f32 %v801_v38, %v797_v25  ;;  %v920_v42 = vmul.f32 %v801_v38, %v801_v38 }
 0x11f   : > { %v1246_v43 = vpack.c.bf16 %v844_v39, %v842_v33  ;;  %v884_v44 = vrot.slane %v883_v34, 4  ;;  %v923_v45 = vadd.f32 %v919_v35, %v915_v23  ;;  %v898_v46 = vrot.slane %v897_v36, 4 }
 0x120   : > { %v937_v47 = vadd.f32 %v921_v37, %v917_v24  ;;  %881 = vst [vmem:[%s210_s24 + $0x10] sm:$0xff] %v1245_v40  ;;  %v891_v48 = vrot.slane %v890_v41, 4  ;;  %v930_v49 = vadd.f32 %v920_v42, %v916_v29  ;;  %v904_v50 = vadd.f32 %v844_v39, %v840_v26 }
 0x121   : > { %882 = vst [vmem:[%s210_s24 + $0x18] sm:$0xff] %v1246_v43  ;;  %v922_v51 = vmul.f32 %v844_v39, %v844_v39  ;;  %v885_v52 = vadd.f32 %v884_v44, %v883_v34  ;;  %v924_v53 = vrot.slane %v923_v45, 4  ;;  %v899_v54 = vadd.f32 %v898_v46, %v897_v36 }
 0x122   : > { %v938_v55 = vrot.slane %v937_v47, 4  ;;  %v892_v56 = vadd.f32 %v891_v48, %v890_v41  ;;  %v931_v57 = vrot.slane %v930_v49, 4  ;;  %v905_v58 = vrot.slane %v904_v50, 4 }
 0x123   : > { %v944_v59 = vadd.f32 %v922_v51, %v918_v31  ;;  %v886_v60 = vrot.slane %v885_v52, 2  ;;  %v925_v61 = vadd.f32 %v924_v53, %v923_v45  ;;  %v900_v62 = vrot.slane %v899_v54, 2 }
 0x124   : > { %v939_v63 = vadd.f32 %v938_v55, %v937_v47  ;;  %v893_v0 = vrot.slane %v892_v56, 2  ;;  %v932_v1 = vadd.f32 %v931_v57, %v930_v49  ;;  %v906_v2 = vadd.f32 %v905_v58, %v904_v50 }
 0x125   : > { %v945_v3 = vrot.slane %v944_v59, 4  ;;  %v887_v5 = vadd.f32 %v886_v60, %v885_v52  ;;  %v926_v6 = vrot.slane %v925_v61, 2  ;;  %v901_v7 = vadd.f32 %v900_v62, %v899_v54 }
 0x126   : > { %v940_v8 = vrot.slane %v939_v63, 2  ;;  %v894_v9 = vadd.f32 %v893_v0, %v892_v56  ;;  %v933_v10 = vrot.slane %v932_v1, 2  ;;  %v907_v4 = vrot.slane %v906_v2, 2 }
 0x127   : > { %v946_v11 = vadd.f32 %v945_v3, %v944_v59  ;;  %v888_v12 = vrot.slane %v887_v5, 1  ;;  %v927_v13 = vadd.f32 %v926_v6, %v925_v61  ;;  %v902_v14 = vrot.slane %v901_v7, 1 }
 0x128   : > { %v941_v15 = vadd.f32 %v940_v8, %v939_v63  ;;  %v895_v16 = vrot.slane %v894_v9, 1  ;;  %v934_v17 = vadd.f32 %v933_v10, %v932_v1  ;;  %v908_v19 = vadd.f32 %v907_v4, %v906_v2 }
 0x129   : > { %v947_v20 = vrot.slane %v946_v11, 2  ;;  %v889_v21 = vadd.f32 %v888_v12, %v887_v5  ;;  %v928_v22 = vrot.slane %v927_v13, 1  ;;  %v903_v23 = vadd.f32 %v902_v14, %v901_v7 }
 0x12a   : > { %v942_v24 = vrot.slane %v941_v15, 1  ;;  %v896_v25 = vadd.f32 %v895_v16, %v894_v9  ;;  %v935_v26 = vrot.slane %v934_v17, 1  ;;  %v909_v28 = vrot.slane %v908_v19, 1 }
 0x12b   : > { %v948_v29 = vadd.f32 %v947_v20, %v946_v11  ;;  %v929_v30 = vadd.f32 %v928_v22, %v927_v13 }
 0x12c   : > { %v943_v31 = vadd.f32 %v942_v24, %v941_v15  ;;  %v936_v32 = vadd.f32 %v935_v26, %v934_v17  ;;  %v959_v33 = vcombine.low %v889_v21, %v896_v25  ;;  %v910_v34 = vadd.f32 %v909_v28, %v908_v19 }
 0x12d   : > { %v949_v35 = vrot.slane %v948_v29, 1 }
 0x12e   : > { %v967_v36 = vrot.slane %v959_v33, %v1591_v27  ;;  %v993_v37 = vcombine.low %v929_v30, %v936_v32  ;;  %v960_v39 = vcombine.low %v903_v23, %v910_v34 }
 0x12f   : > { %v950_v38 = vadd.f32 %v949_v35, %v948_v29 }
 0x130   : > { %v1001_v40 = vrot.slane %v993_v37, %v1591_v27  ;;  %v974_v41 = vrot.slane %v960_v39, %v1591_v27 }
 0x131   : > { %v994_v42 = vcombine.low %v943_v31, %v950_v38 }
 0x132   : > { %v975_v43 = vcombine.low %v967_v36, %v974_v41 }
 0x133   : > { %v1008_v44 = vrot.slane %v994_v42, %v1591_v27 }
 0x134   : > { %v982_v45 = vrot.slane %v975_v43, %v1591_v27 }
 0x135   : > { %v1009_v46 = vcombine.low %v1001_v40, %v1008_v44 }
 0x136   : > { %988 = vst.msk [vmem:[%s214_s28] sm:$0xf] %vm986_vm11, %v982_v45 }
 0x137   : > { %v1016_v47 = vrot.slane %v1009_v46, %v1591_v27 }
 0x139   : > { %1018 = vst.msk [vmem:[%s218_s5] sm:$0xf] %vm986_vm11, %v1016_v47 }
 0x13a PF: > { %s15_s15 = sadd.s32 1, %s1353_s15  }
 0x13b   : > { %p12_p4 = scmp.ge.s32.totalorder %s15_s15, 4  }
 0x13d   :  { %14 = sbr.rel (!%p12_p4) target bundleno = 1 (0x1), region = 84 }

// kernel: conv_block.5
= control target key start
LH: loop header
LB: loop body
LE: loop exit
PB: predicated region body
PF: predicated region fallthrough
CT: control target
= control target key end

     0   :  { %s363_s12 = smov 0   ;;  %s390_s0 = inlined_call_operand.vmem [shape: bf16[2,16,512], index: 0, kind: input, shape index: {}]   ;;  %s391_s1 = inlined_call_operand.vmem [shape: f32[1,512], index: 1, kind: input, shape index: {}]   ;;  %s392_s2 = inlined_call_operand.vmem [shape: f32[1,512], index: 2, kind: input, shape index: {}]   ;;  %s393_s3 = inlined_call_operand.vmem [shape: f32[2,16,512], index: 3, kind: output, shape index: {}]  }
   0x1 LB: > { %s314_s13 = sadd.s32 4294967295, %s341_s12   ;;  %p318_p0 = scmp.ge.s32.totalorder %s341_s12, 1  ;;  %s341_s12 = sphi %s363_s12, %s13_s12  }
   0x2   : > { %p137_p1 = scmp.lt.s32.totalorder %s341_s12, 3 }
   0x4   : > { %p138_p2 = pnand %p318_p0, %p137_p1 }
   0x5   : > { %p161_p3 = scmp.lt.s32.totalorder (!%p138_p2), %s314_s13, 1  ;;  %v185_v0 = vlaneseq (!%p138_p2)  ;;  %v183_v2 = vld [vmem:[%s391_s1] sm:$0xf] (!%p138_p2) }
   0x6   : > { %141 = sbr.rel (%p138_p2) target bundleno = 29 (0x1d), region = 32  ;;  %v213_v3 = vld [vmem:[%s392_s2] sm:$0xf] (!%p138_p2) }
   0x7   : > { %v186_v1 = vshrl.u32 (!%p138_p2), %v185_v0, 7 }
   0x9   : > { %v187_v4 = vsub.s32 (!%p138_p2), 0, %v186_v1  ;;  %v191_v5 = vsub.s32 (!%p138_p2), 1, %v186_v1  ;;  %v195_v6 = vsub.s32 (!%p138_p2), 2, %v186_v1  ;;  %v199_v7 = vsub.s32 (!%p138_p2), 3, %v186_v1 }
   0xb   : > { %v188_v9 = vrot.slane (!%p138_p2), %v183_v2, %v187_v4  ;;  %v218_v10 = vrot.slane (!%p138_p2), %v213_v3, %v187_v4  ;;  %v192_v11 = vrot.slane (!%p138_p2), %v183_v2, %v191_v5  ;;  %v222_v12 = vrot.slane (!%p138_p2), %v213_v3, %v191_v5 }
   0xc   : > { %v196_v18 = vrot.slane (!%p138_p2), %v183_v2, %v195_v6  ;;  %v226_v20 = vrot.slane (!%p138_p2), %v213_v3, %v195_v6  ;;  %v200_v22 = vrot.slane (!%p138_p2), %v183_v2, %v199_v7  ;;  %v230_v23 = vrot.slane (!%p138_p2), %v213_v3, %v199_v7 }
   0xd   : > { %s395_s13 = smov (!%p161_p3, %s314_s13), 1 }
   0xe   : > { %s325_s18 = sshll.u32 %s395_s13, 5  ;;  %s326_s22 = sshll.u32 %s395_s13, 6 }
   0xf   : > { %s165_s21 = scalar_lea.vmem %s390_s0, %s325_s18  ;;  %s170_s25 = scalar_lea.vmem %s393_s3, %s326_s22 }
  0x10   : > { %v171_v8 = vld [vmem:[%s165_s21] sm:$0xff]  ;;  %v172_v13 = vld [vmem:[%s165_s21 + $0x8] sm:$0xff]  ;;  %v173_v14 = vld [vmem:[%s165_s21 + $0x10] sm:$0xff] }
  0x11   : > { %v175_v15 = vunpack.c.l.bf16 %v171_v8  ;;  %v176_v16 = vunpack.c.h.bf16 %v171_v8  ;;  %v177_v17 = vunpack.c.l.bf16 %v172_v13  ;;  %v174_v19 = vld [vmem:[%s165_s21 + $0x18] sm:$0xff]  ;;  %v178_v21 = vunpack.c.h.bf16 %v172_v13 }
  0x12   : > { %v179_v27 = vunpack.c.l.bf16 %v173_v14  ;;  %v180_v29 = vunpack.c.h.bf16 %v173_v14  ;;  %v181_v30 = vunpack.c.l.bf16 %v174_v19  ;;  %v182_v31 = vunpack.c.h.bf16 %v174_v19 }
  0x13   : > { %v205_v24 = vmul.f32 %v188_v9, %v175_v15  ;;  %v206_v25 = vmul.f32 %v192_v11, %v176_v16  ;;  %v207_v26 = vmul.f32 %v196_v18, %v177_v17  ;;  %v208_v28 = vmul.f32 %v200_v22, %v178_v21 }
  0x14   : > { %v209_v35 = vmul.f32 %v188_v9, %v179_v27  ;;  %v210_v37 = vmul.f32 %v192_v11, %v180_v29  ;;  %v211_v38 = vmul.f32 %v196_v18, %v181_v30  ;;  %v212_v39 = vmul.f32 %v200_v22, %v182_v31 }
  0x15   : > { %v235_v32 = vadd.f32 %v218_v10, %v205_v24  ;;  %v236_v33 = vadd.f32 %v222_v12, %v206_v25  ;;  %v237_v34 = vadd.f32 %v226_v20, %v207_v26  ;;  %v238_v36 = vadd.f32 %v230_v23, %v208_v28 }
  0x16   : > { %v239_v43 = vadd.f32 %v218_v10, %v209_v35  ;;  %v240_v45 = vadd.f32 %v222_v12, %v210_v37  ;;  %v241_v46 = vadd.f32 %v226_v20, %v211_v38  ;;  %v242_v47 = vadd.f32 %v230_v23, %v212_v39 }
  0x17   : > { %v243_v40 = vmax.f32 %v235_v32, 0.0  ;;  %v244_v41 = vmax.f32 %v236_v33, 0.0  ;;  %v245_v42 = vmax.f32 %v237_v34, 0.0  ;;  %v246_v44 = vmax.f32 %v238_v36, 0.0 }
  0x18   : > { %v247_v48 = vmax.f32 %v239_v43, 0.0  ;;  %v248_v49 = vmax.f32 %v240_v45, 0.0  ;;  %v249_v50 = vmax.f32 %v241_v46, 0.0  ;;  %v250_v51 = vmax.f32 %v242_v47, 0.0 }
  0x19   : > { %251 = vst [vmem:[%s170_s25] sm:$0xff] %v243_v40  ;;  %252 = vst [vmem:[%s170_s25 + $0x8] sm:$0xff] %v244_v41 }
  0x1a   : > { %253 = vst [vmem:[%s170_s25 + $0x10] sm:$0xff] %v245_v42  ;;  %254 = vst [vmem:[%s170_s25 + $0x18] sm:$0xff] %v246_v44 }
  0x1b   : > { %255 = vst [vmem:[%s170_s25 + $0x20] sm:$0xff] %v247_v48  ;;  %256 = vst [vmem:[%s170_s25 + $0x28] sm:$0xff] %v248_v49 }
  0x1c   : > { %257 = vst [vmem:[%s170_s25 + $0x30] sm:$0xff] %v249_v50  ;;  %258 = vst [vmem:[%s170_s25 + $0x38] sm:$0xff] %v250_v51 }
  0x1d PF: > { %s13_s12 = sadd.s32 1, %s341_s12  }
  0x1e   : > { %p10_p4 = scmp.ge.s32.totalorder %s13_s12, 4  }
  0x20   :  { %12 = sbr.rel (!%p10_p4) target bundleno = 1 (0x1), region = 62 }

// kernel: conv_block.4
= control target key start
LH: loop header
LB: loop body
LE: loop exit
PB: predicated region body
PF: predicated region fallthrough
CT: control target
= control target key end

     0   :  { %s5021_s21 = smov 0   ;;  %s6357_s0 = inlined_call_operand.vmem [shape: bf16[2,16,512], index: 0, kind: input, shape index: {}]   ;;  %s6358_s1 = inlined_call_operand.vmem [shape: f32[1,512], index: 1, kind: input, shape index: {}]   ;;  %s6359_s2 = inlined_call_operand.vmem [shape: f32[1,512], index: 2, kind: input, shape index: {}]   ;;  %s6360_s3 = inlined_call_operand.vmem [shape: bf16[3,512,512], index: 3, kind: input, shape index: {}]   ;;  %s6361_s4 = inlined_call_operand.vmem [shape: bf16[2,16,512], index: 4, kind: output, shape index: {0}]   ;;  %s6362_s5 = inlined_call_operand.vmem [shape: f32[2,1,512], index: 5, kind: output, shape index: {1}]   ;;  %s6363_s6 = inlined_call_operand.vmem [shape: f32[2,1,512], index: 6, kind: output, shape index: {2}]  }
   0x1 LB: > { %s3667_s22 = sadd.s32 4294967295, %s4982_s21   ;;  %p3671_p0 = scmp.ge.s32.totalorder %s4982_s21, 1  ;;  %s4982_s21 = sphi %s5021_s21, %s17_s21  }
   0x2   : > { %p217_p1 = scmp.lt.s32.totalorder %s4982_s21, 3 }
   0x4   : > { %p218_p2 = pnand %p3671_p0, %p217_p1 }
   0x5   : > { %v4396_v0 = vld [vmem:[%s6360_s3 + $0x404] ss:$16 sps:$4 sm:$0xff] (!%p218_p2)   ;;  %v4398_v1 = vld [vmem:[%s6360_s3 + $0x40c] ss:$16 sps:$4 sm:$0xff] (!%p218_p2)   ;;  %v4984_v2 = vmov (!%p218_p2), 0   ;;  %p255_p3 = scmp.lt.s32.totalorder (!%p218_p2), %s3667_s22, 1  ;;  %v294_v38 = vlaneseq (!%p218_p2) }
   0x6   : > { %221 = sbr.rel (%p218_p2) target bundleno = 636 (0x27c), region = 36  ;;  %278 = vst [vmem:[#allocation2 + $0x20] sm:$0x11] (!%p218_p2), %v4984_v2  ;;  %279 = vst [vmem:[#allocation2 + $0x28] sm:$0x11] (!%p218_p2), %v4984_v2  ;;  %1432 = vmatprep.subr.bf16.mxu0 (!%p218_p2), %v4396_v0  ;;  %1518 = vmatprep.subr.bf16.mxu1 (!%p218_p2), %v4398_v1  ;;  %vm423_vm0 = vcmask (!%p218_p2), 1043456  }
   0x7   : > { %v4400_v3 = vld [vmem:[%s6360_s3 + $0x400] ss:$16 sps:$4 sm:$0xff] (!%p218_p2)   ;;  %v4401_v4 = vld [vmem:[%s6360_s3 + $0x408] ss:$16 sps:$4 sm:$0xff] (!%p218_p2)   ;;  %v4402_v5 = vld [vmem:[%s6360_s3 + $0x424] ss:$16 sps:$4 sm:$0xff] (!%p218_p2)  }
   0x8   : > { %1433 = vmatpush1.bf16.msra.mxu0 (!%p218_p2), %v4400_v3  ;;  %1519 = vmatpush1.bf16.msra.mxu1 (!%p218_p2), %v4401_v4  ;;  %v4404_v6 = vld [vmem:[%s6360_s3 + $0x42c] ss:$16 sps:$4 sm:$0xff] (!%p218_p2)   ;;  %v4406_v7 = vld [vmem:[%s6360_s3 + $0x420] ss:$16 sps:$4 sm:$0xff] (!%p218_p2)   ;;  %v4407_v8 = vld [vmem:[%s6360_s3 + $0x428] ss:$16 sps:$4 sm:$0xff] (!%p218_p2)  }
   0x9   : > { %1434 = vmatprep.subr.bf16.mxu0 (!%p218_p2), %v4402_v5  ;;  %1520 = vmatprep.subr.bf16.mxu1 (!%p218_p2), %v4404_v6  ;;  %v4408_v9 = vld [vmem:[%s6360_s3 + $0x444] ss:$16 sps:$4 sm:$0xff] (!%p218_p2)   ;;  %v4410_v10 = vld [vmem:[%s6360_s3 + $0x44c] ss:$16 sps:$4 sm:$0xff] (!%p218_p2)   ;;  %v4412_v11 = vld [vmem:[%s6360_s3 + $0x440] ss:$16 sps:$4 sm:$0xff] (!%p218_p2)  }
   0xa   : > { %v4413_v12 = vld [vmem:[%s6360_s3 + $0x448] ss:$16 sps:$4 sm:$0xff] (!%p218_p2)   ;;  %v4414_v13 = vld [vmem:[%s6360_s3 + $0x464] ss:$16 sps:$4 sm:$0xff] (!%p218_p2)   ;;  %v4416_v14 = vld [vmem:[%s6360_s3 + $0x46c] ss:$16 sps:$4 sm:$0xff] (!%p218_p2)  }
   0xb   : > { %v4418_v15 = vld [vmem:[%s6360_s3 + $0x460] ss:$16 sps:$4 sm:$0xff] (!%p218_p2)   ;;  %v4419_v16 = vld [vmem:[%s6360_s3 + $0x468] ss:$16 sps:$4 sm:$0xff] (!%p218_p2)   ;;  %v4420_v17 = vld [vmem:[%s6360_s3 + $0x484] ss:$16 sps:$4 sm:$0xff] (!%p218_p2)  }
   0xc   : > { %1435 = vmatpush1.bf16.msra.mxu0 (!%p218_p2), %v4406_v7  ;;  %1521 = vmatpush1.bf16.msra.mxu1 (!%p218_p2), %v4407_v8  ;;  %v4422_v18 = vld [vmem:[%s6360_s3 + $0x48c] ss:$16 sps:$4 sm:$0xff] (!%p218_p2)   ;;  %v4424_v19 = vld [vmem:[%s6360_s3 + $0x480] ss:$16 sps:$4 sm:$0xff] (!%p218_p2)   ;;  %v4425_v20 = vld [vmem:[%s6360_s3 + $0x488] ss:$16 sps:$4 sm:$0xff] (!%p218_p2)  }
   0xd   : > { %1436 = vmatprep.subr.bf16.mxu0 %v4408_v9  ;;  %1522 = vmatprep.subr.bf16.mxu1 %v4410_v10  ;;  %v4426_v21 = vld [vmem:[%s6360_s3 + $0x4a4] ss:$16 sps:$4 sm:$0xff]   ;;  %v4428_v22 = vld [vmem:[%s6360_s3 + $0x4ac] ss:$16 sps:$4 sm:$0xff]   ;;  %v4430_v23 = vld [vmem:[%s6360_s3 + $0x4a0] ss:$16 sps:$4 sm:$0xff]  }
   0xe   : > { %v4431_v24 = vld [vmem:[%s6360_s3 + $0x4a8] ss:$16 sps:$4 sm:$0xff]   ;;  %v4432_v25 = vld [vmem:[%s6360_s3 + $0x4c4] ss:$16 sps:$4 sm:$0xff]   ;;  %v4434_v26 = vld [vmem:[%s6360_s3 + $0x4cc] ss:$16 sps:$4 sm:$0xff]  }
   0xf   : > { %v4436_v27 = vld [vmem:[%s6360_s3 + $0x4c0] ss:$16 sps:$4 sm:$0xff]   ;;  %v4437_v28 = vld [vmem:[%s6360_s3 + $0x4c8] ss:$16 sps:$4 sm:$0xff]   ;;  %v4438_v29 = vld [vmem:[%s6360_s3 + $0x4e4] ss:$16 sps:$4 sm:$0xff]  }
  0x10   : > { %1437 = vmatpush1.bf16.msra.mxu0 %v4412_v11  ;;  %1523 = vmatpush1.bf16.msra.mxu1 %v4413_v12  ;;  %v4440_v30 = vld [vmem:[%s6360_s3 + $0x4ec] ss:$16 sps:$4 sm:$0xff]   ;;  %v4442_v31 = vld [vmem:[%s6360_s3 + $0x4e0] ss:$16 sps:$4 sm:$0xff]   ;;  %v4443_v32 = vld [vmem:[%s6360_s3 + $0x4e8] ss:$16 sps:$4 sm:$0xff]  }
  0x11   : > { %1438 = vmatprep.subr.bf16.mxu0 %v4414_v13  ;;  %1524 = vmatprep.subr.bf16.mxu1 %v4416_v14  ;;  %v4444_v33 = vld [vmem:[%s6360_s3 + $0x504] ss:$16 sps:$4 sm:$0xff]   ;;  %v4446_v34 = vld [vmem:[%s6360_s3 + $0x50c] ss:$16 sps:$4 sm:$0xff]   ;;  %v4448_v35 = vld [vmem:[%s6360_s3 + $0x500] ss:$16 sps:$4 sm:$0xff]  }
  0x12   : > { %v4449_v36 = vld [vmem:[%s6360_s3 + $0x508] ss:$16 sps:$4 sm:$0xff]   ;;  %v4450_v37 = vld [vmem:[%s6360_s3 + $0x524] ss:$16 sps:$4 sm:$0xff]   ;;  %v4452_v39 = vld [vmem:[%s6360_s3 + $0x52c] ss:$16 sps:$4 sm:$0xff]  }
  0x13   : > { %s6375_s22 = smov (!%p255_p3, %s3667_s22), 1  ;;  %v4454_v40 = vld [vmem:[%s6360_s3 + $0x520] ss:$16 sps:$4 sm:$0xff]   ;;  %v4455_v41 = vld [vmem:[%s6360_s3 + $0x528] ss:$16 sps:$4 sm:$0xff]   ;;  %v5159_v43 = vshrl.u32 %v294_v38, 7 }
  0x14   : > { %1439 = vmatpush1.bf16.msra.mxu0 %v4418_v15  ;;  %1525 = vmatpush1.bf16.msra.mxu1 %v4419_v16  ;;  %v4456_v42 = vld [vmem:[%s6360_s3 + $0x544] ss:$16 sps:$4 sm:$0xff]   ;;  %v4458_v44 = vld [vmem:[%s6360_s3 + $0x54c] ss:$16 sps:$4 sm:$0xff]   ;;  %s4336_s17 = sshll.u32 %s6375_s22, 5  ;;  %vm426_vm2 = vcmask 1047556  }
  0x15   : > { %1440 = vmatprep.subr.bf16.mxu0 %v4420_v17  ;;  %1526 = vmatprep.subr.bf16.mxu1 %v4422_v18  ;;  %v4460_v45 = vld [vmem:[%s6360_s3 + $0x540] ss:$16 sps:$4 sm:$0xff]   ;;  %v4461_v46 = vld [vmem:[%s6360_s3 + $0x548] ss:$16 sps:$4 sm:$0xff]   ;;  %v4462_v47 = vld [vmem:[%s6360_s3 + $0x564] ss:$16 sps:$4 sm:$0xff]   ;;  %s259_s28 = scalar_lea.vmem %s6357_s0, %s4336_s17  ;;  %s264_s18 = scalar_lea.vmem %s6361_s4, %s4336_s17 }
  0x16   : > { %v296_v48 = vsub.s32 0, %v5159_v43  ;;  %v4464_v49 = vld [vmem:[%s6360_s3 + $0x56c] ss:$16 sps:$4 sm:$0xff]   ;;  %v300_v50 = vsub.s32 1, %v5159_v43  ;;  %v304_v51 = vsub.s32 2, %v5159_v43  ;;  %v280_v53 = vld [vmem:[%s259_s28] sm:$0xff] }
  0x17   : > { %v4466_v52 = vld [vmem:[%s6360_s3 + $0x560] ss:$16 sps:$4 sm:$0xff]   ;;  %v308_v54 = vsub.s32 3, %v5159_v43  ;;  %vm424_vm1 = vsmask.f32 7938  ;;  %v281_v55 = vld [vmem:[%s259_s28 + $0x8] sm:$0xff]  ;;  %v284_v58 = vunpack.c.l.bf16 %v280_v53  ;;  %v285_v59 = vunpack.c.h.bf16 %v280_v53 }
  0x18   : > { %1441 = vmatpush1.bf16.msra.mxu0 %v4424_v19  ;;  %1527 = vmatpush1.bf16.msra.mxu1 %v4425_v20  ;;  %v282_v56 = vld [vmem:[%s259_s28 + $0x10] sm:$0xff]  ;;  %v283_v57 = vld [vmem:[%s259_s28 + $0x18] sm:$0xff]  ;;  %vm427_vm3 = vsmask.f32 7954  ;;  %v286_v61 = vunpack.c.l.bf16 %v281_v55  ;;  %v287_v62 = vunpack.c.h.bf16 %v281_v55  ;;  %v292_v1 = vld [vmem:[%s6358_s1] sm:$0xf] }
  0x19   : > { %1442 = vmatprep.subr.bf16.mxu0 %v4426_v21  ;;  %1528 = vmatprep.subr.bf16.mxu1 %v4428_v22  ;;  %v4467_v60 = vld [vmem:[%s6360_s3 + $0x568] ss:$16 sps:$4 sm:$0xff]   ;;  %v288_v63 = vunpack.c.l.bf16 %v282_v56  ;;  %v289_v0 = vunpack.c.h.bf16 %v282_v56  ;;  %v322_v2 = vld [vmem:[%s6359_s2] sm:$0xf]  ;;  %vm380_vm4 = vsmask.f32 256  ;;  %v290_v5 = vunpack.c.l.bf16 %v283_v57  ;;  %vm5230_vm8 = vmand %vm423_vm0, %vm424_vm1 }
  0x1a   : > { %v4468_v3 = vld [vmem:[%s6360_s3 + $0x584] ss:$16 sps:$4 sm:$0xff]   ;;  %v4470_v4 = vld [vmem:[%s6360_s3 + $0x58c] ss:$16 sps:$4 sm:$0xff]   ;;  %v291_v6 = vunpack.c.h.bf16 %v283_v57  ;;  %v297_v7 = vrot.slane %v292_v1, %v296_v48  ;;  %v301_v8 = vrot.slane %v292_v1, %v300_v50  ;;  %vm441_vm5 = vsmask.f32 4352  ;;  %vm5242_vm10 = vmand %vm426_vm2, %vm427_vm3 }
  0x1b   : > { %v305_v9 = vrot.slane %v292_v1, %v304_v51  ;;  %v309_v10 = vrot.slane %v292_v1, %v308_v54  ;;  %v327_v11 = vrot.slane %v322_v2, %v296_v48  ;;  %v331_v12 = vrot.slane %v322_v2, %v300_v50  ;;  %v4472_v17 = vld [vmem:[%s6360_s3 + $0x580] ss:$16 sps:$4 sm:$0xff]   ;;  %v4473_v18 = vld [vmem:[%s6360_s3 + $0x588] ss:$16 sps:$4 sm:$0xff]   ;;  %v4474_v22 = vld [vmem:[%s6360_s3 + $0x5a4] ss:$16 sps:$4 sm:$0xff]  }
  0x1c   : > { %1443 = vmatpush1.bf16.msra.mxu0 %v4430_v23  ;;  %1529 = vmatpush1.bf16.msra.mxu1 %v4431_v24  ;;  %v314_v13 = vmul.f32 %v297_v7, %v284_v58  ;;  %v315_v14 = vmul.f32 %v301_v8, %v285_v59  ;;  %v318_v15 = vmul.f32 %v297_v7, %v288_v63  ;;  %vm438_vm6 = vcmask 1040384   ;;  %v4476_v23 = vld [vmem:[%s6360_s3 + $0x5ac] ss:$16 sps:$4 sm:$0xff]   ;;  %v4484_v50 = vld [vmem:[%s6360_s3 + $0x5c0] ss:$16 sps:$4 sm:$0xff]   ;;  %vm429_vm14 = vmor %vm5242_vm10, %vm5230_vm8  ;;  %s3676_s17 = sshll.u32 %s6375_s22, 2 }
  0x1d   : > { %1444 = vmatprep.subr.bf16.mxu0 %v4432_v25  ;;  %1530 = vmatprep.subr.bf16.mxu1 %v4434_v26  ;;  %v319_v16 = vmul.f32 %v301_v8, %v289_v0  ;;  %v316_v19 = vmul.f32 %v305_v9, %v286_v61  ;;  %v317_v20 = vmul.f32 %v309_v10, %v287_v62  ;;  %vm440_vm7 = vcmask 1044484   ;;  %v4486_v55 = vld [vmem:[%s6360_s3 + $0x5e4] ss:$16 sps:$4 sm:$0xff]   ;;  %vm5251_vm11 = vmand %vm438_vm6, %vm380_vm4  ;;  %v4488_v59 = vld [vmem:[%s6360_s3 + $0x5ec] ss:$16 sps:$4 sm:$0xff]   ;;  %s268_s23 = scalar_lea.vmem %s6362_s5, %s3676_s17  ;;  %s272_s26 = scalar_lea.vmem %s6363_s6, %s3676_s17 }
  0x1e   : > { %v320_v21 = vmul.f32 %v305_v9, %v290_v5  ;;  %v321_v24 = vmul.f32 %v309_v10, %v291_v6  ;;  %v335_v25 = vrot.slane %v322_v2, %v304_v51  ;;  %v339_v26 = vrot.slane %v322_v2, %v308_v54  ;;  %v4485_v51 = vld [vmem:[%s6360_s3 + $0x5c8] ss:$16 sps:$4 sm:$0xff]   ;;  %vm5260_vm12 = vmand %vm440_vm7, %vm441_vm5  ;;  %v444_v6 = vld [vmem:[#allocation2 + $0x20] sm:$0x11] }
  0x1f   : > { %vm381_vm9 = vsmask.f32 4368  ;;  %v4490_v7 = vld [vmem:[%s6360_s3 + $0x5e0] ss:$16 sps:$4 sm:$0xff]   ;;  %vm443_vm15 = vmor %vm5260_vm12, %vm5251_vm11  ;;  %vm739_vm0 = vsmask.f32 7424 }
  0x20   : > { %1445 = vmatpush1.bf16.msra.mxu0 %v4436_v27  ;;  %1531 = vmatpush1.bf16.msra.mxu1 %v4437_v28  ;;  %v4478_v27 = vld [vmem:[%s6360_s3 + $0x5a0] ss:$16 sps:$4 sm:$0xff]   ;;  %v344_v28 = vadd.f32 %v327_v11, %v314_v13  ;;  %vm5266_vm13 = vmor %vm380_vm4, %vm381_vm9  ;;  %v4503_v54 = vld [vmem:[%s6360_s3 + $0x628] ss:$16 sps:$4 sm:$0xff]   ;;  %vm2549_vm1 = vcmask 1046528   ;;  %vm3517_vm2 = vcmp.lt.s32.totalorder %v294_v38, 512 }
  0x21   : > { %1446 = vmatprep.subr.bf16.mxu0 %v4438_v29  ;;  %1532 = vmatprep.subr.bf16.mxu1 %v4440_v30  ;;  %v345_v29 = vadd.f32 %v331_v12, %v315_v14  ;;  %v348_v30 = vadd.f32 %v327_v11, %v318_v15  ;;  %v4520_v1 = vld [vmem:[%s6360_s3 + $0x684] ss:$16 sps:$4 sm:$0xff]   ;;  %v4535_v0 = vld [vmem:[%s6360_s3 + $0x6cc] ss:$16 sps:$4 sm:$0xff]  }
  0x24   : > { %1447 = vmatpush1.bf16.msra.mxu0 %v4442_v31  ;;  %1533 = vmatpush1.bf16.msra.mxu1 %v4443_v32  ;;  %v349_v31 = vadd.f32 %v331_v12, %v319_v16  ;;  %v4479_v32 = vld [vmem:[%s6360_s3 + $0x5a8] ss:$16 sps:$4 sm:$0xff]  }
  0x25   : > { %1448 = vmatprep.subr.bf16.mxu0 %v4444_v33  ;;  %1534 = vmatprep.subr.bf16.mxu1 %v4446_v34  ;;  %v346_v33 = vadd.f32 %v335_v25, %v316_v19  ;;  %v347_v34 = vadd.f32 %v339_v26, %v317_v20  ;;  %v4491_v12 = vld [vmem:[%s6360_s3 + $0x5e8] ss:$16 sps:$4 sm:$0xff]  }
  0x28   : > { %1449 = vmatpush1.bf16.msra.mxu0 %v4448_v35  ;;  %1535 = vmatpush1.bf16.msra.mxu1 %v4449_v36  ;;  %v350_v35 = vadd.f32 %v335_v25, %v320_v21  ;;  %v351_v36 = vadd.f32 %v339_v26, %v321_v24  ;;  %v4498_v21 = vld [vmem:[%s6360_s3 + $0x60c] ss:$16 sps:$4 sm:$0xff]  }
  0x29   : > { %1450 = vmatprep.subr.bf16.mxu0 %v4450_v37  ;;  %1536 = vmatprep.subr.bf16.mxu1 %v4452_v39  ;;  %v4480_v37 = vld [vmem:[%s6360_s3 + $0x5c4] ss:$16 sps:$4 sm:$0xff]   ;;  %v352_v39 = vmax.f32 %v344_v28, 0.0 }
  0x2a   : > { %v359_v48 = vmax.f32 %v351_v36, 0.0 }
  0x2c   : > { %1451 = vmatpush1.bf16.msra.mxu0 %v4454_v40  ;;  %1537 = vmatpush1.bf16.msra.mxu1 %v4455_v41  ;;  %v353_v40 = vmax.f32 %v345_v29, 0.0  ;;  %v356_v41 = vmax.f32 %v348_v30, 0.0 }
  0x2d   : > { %1452 = vmatprep.subr.bf16.mxu0 %v4456_v42  ;;  %1538 = vmatprep.subr.bf16.mxu1 %v4458_v44  ;;  %v357_v42 = vmax.f32 %v349_v31, 0.0  ;;  %v4482_v44 = vld [vmem:[%s6360_s3 + $0x5cc] ss:$16 sps:$4 sm:$0xff]  }
  0x2f   : > { %v4340_v53 = vpack.c.bf16 %v357_v42, %v356_v41 }
  0x30   : > { %1453 = vmatpush1.bf16.msra.mxu0 %v4460_v45  ;;  %1539 = vmatpush1.bf16.msra.mxu1 %v4461_v46  ;;  %v354_v45 = vmax.f32 %v346_v33, 0.0  ;;  %v355_v46 = vmax.f32 %v347_v34, 0.0 }
  0x31   : > { %1454 = vmatprep.subr.bf16.mxu0 %v4462_v47  ;;  %1540 = vmatprep.subr.bf16.mxu1 %v4464_v49  ;;  %v358_v47 = vmax.f32 %v350_v35, 0.0  ;;  %v399_v62 = vshrl.u32 %v4340_v53, 16  ;;  %v402_v63 = vshll.u32 %v4340_v53, 16  ;;  %v4500_v53 = vld [vmem:[%s6360_s3 + $0x620] ss:$16 sps:$4 sm:$0xff]  }
  0x32   : > { %v4339_v56 = vpack.c.bf16 %v355_v46, %v354_v45 }
  0x33   : > { %v4341_v57 = vpack.c.bf16 %v359_v48, %v358_v47  ;;  %v401_v9 = vrot.slane %v399_v62, 7  ;;  %v4493_v47 = vld [vmem:[%s6360_s3 + $0x600] ss:$16 sps:$4 sm:$0xff]   ;;  %v4496_v48 = vld [vmem:[%s6360_s3 + $0x608] ss:$16 sps:$4 sm:$0xff]  }
  0x34   : > { %1455 = vmatpush1.bf16.msra.mxu0 %v4466_v52  ;;  %1541 = vmatpush1.bf16.msra.mxu1 %v4467_v60  ;;  %v4338_v52 = vpack.c.bf16 %v353_v40, %v352_v39  ;;  %v391_v2 = vshrl.u32 %v4339_v56, 16  ;;  %v4512_v62 = vld [vmem:[%s6360_s3 + $0x660] ss:$16 sps:$4 sm:$0xff]  }
  0x35   : > { %1456 = vmatprep.subr.bf16.mxu0 %v4468_v3  ;;  %1542 = vmatprep.subr.bf16.mxu1 %v4470_v4  ;;  %v394_v3 = vshll.u32 %v4339_v56, 16  ;;  %v408_v4 = vshrl.u32 %v4341_v57, 16  ;;  %v411_v5 = vshll.u32 %v4341_v57, 16  ;;  %v404_v15 = vor.u32 %v402_v63, %v401_v9  ;;  %v4511_v56 = vld [vmem:[%s6360_s3 + $0x64c] ss:$16 sps:$4 sm:$0xff]  }
  0x36   : > { %v384_v60 = vshrl.u32 %v4338_v52, 16  ;;  %v387_v61 = vshll.u32 %v4338_v52, 16  ;;  %v393_v10 = vrot.slane %v391_v2, 7  ;;  %v415_v16 = vrot.slane %v401_v9, 4  ;;  %v4505_v52 = vld [vmem:[%s6360_s3 + $0x62c] ss:$16 sps:$4 sm:$0xff]  }
  0x37   : > { %v5277_v11 = vrot.slane %v408_v4, 7  ;;  %v4506_v57 = vld [vmem:[%s6360_s3 + $0x640] ss:$16 sps:$4 sm:$0xff]   ;;  %v4515_v63 = vld [vmem:[%s6360_s3 + $0x668] ss:$16 sps:$4 sm:$0xff]  }
  0x38   : > { %1457 = vmatpush1.bf16.msra.mxu0 %v4472_v17  ;;  %1543 = vmatpush1.bf16.msra.mxu1 %v4473_v18  ;;  %v386_v8 = vrot.slane %v384_v60, 7  ;;  %v4495_v17 = vld [vmem:[%s6360_s3 + $0x604] ss:$16 sps:$4 sm:$0xff]   ;;  %v396_v18 = vor.u32 %v394_v3, %v393_v10  ;;  %v406_v19 = vrot.slane %v393_v10, 4  ;;  %v445_v24 = vsel %vm443_vm15, %v415_v16, %v444_v6  ;;  %v4523_v2 = vld [vmem:[%s6360_s3 + $0x68c] ss:$16 sps:$4 sm:$0xff]  }
  0x39   : > { %1458 = vmatprep.subr.bf16.mxu0 %v4474_v22  ;;  %1544 = vmatprep.subr.bf16.mxu1 %v4476_v23  ;;  %v413_v20 = vor.u32 %v411_v5, %v5277_v11  ;;  %446 = vst [vmem:[#allocation2 + $0x20] sm:$0x11] %v445_v24  ;;  %v4514_v60 = vld [vmem:[%s6360_s3 + $0x664] ss:$16 sps:$4 sm:$0xff]   ;;  %v416_v3 = vrot.slane %v5277_v11, 4 }
  0x3a   : > { %v389_v13 = vor.u32 %v387_v61, %v386_v8  ;;  %v397_v14 = vrot.slane %v386_v8, 4  ;;  %v5318_v28 = vsel %vm429_vm14, %v396_v18, 0  ;;  %v4517_v61 = vld [vmem:[%s6360_s3 + $0x66c] ss:$16 sps:$4 sm:$0xff]   ;;  %v4518_v4 = vld [vmem:[%s6360_s3 + $0x680] ss:$16 sps:$4 sm:$0xff]  }
  0x3b   : > { %v5307_v25 = vsel %vm5266_vm13, %v406_v19, %v413_v20  ;;  %v4521_v5 = vld [vmem:[%s6360_s3 + $0x688] ss:$16 sps:$4 sm:$0xff]   ;;  %v4526_v6 = vld [vmem:[%s6360_s3 + $0x6a4] ss:$16 sps:$4 sm:$0xff]   ;;  %v4524_v10 = vld [vmem:[%s6360_s3 + $0x6a0] ss:$16 sps:$4 sm:$0xff]  }
  0x3c   : > { %1459 = vmatpush1.bf16.msra.mxu0 %v4478_v27  ;;  %1545 = vmatpush1.bf16.msra.mxu1 %v4479_v32  ;;  %v405_v22 = vsel %vm5266_vm13, %v397_v14, %v404_v15  ;;  %v431_v23 = vsel %vm429_vm14, %v389_v13, 0  ;;  %v5322_v29 = vcombine.low %v5318_v28, %v5307_v25  ;;  %v447_v8 = vld [vmem:[#allocation2 + $0x28] sm:$0x11]  ;;  %v5399_v9 = vcombine.high %v5318_v28, %v5307_v25  ;;  %v4532_v13 = vld [vmem:[%s6360_s3 + $0x6c4] ss:$16 sps:$4 sm:$0xff]  }
  0x3d   : > { %1460 = vmatprep.subr.bf16.mxu0 %v4480_v37  ;;  %1546 = vmatprep.subr.bf16.mxu1 %v4482_v44  ;;  %v5309_v26 = vcombine.high %v431_v23, %v405_v22  ;;  %v5311_v27 = vcombine.low %v431_v23, %v405_v22  ;;  %v448_v11 = vsel %vm443_vm15, %v416_v3, %v447_v8  ;;  %v4530_v14 = vld [vmem:[%s6360_s3 + $0x6c0] ss:$16 sps:$4 sm:$0xff]   ;;  %v4533_v15 = vld [vmem:[%s6360_s3 + $0x6c8] ss:$16 sps:$4 sm:$0xff]   ;;  %v4538_v16 = vld [vmem:[%s6360_s3 + $0x6e4] ss:$16 sps:$4 sm:$0xff]  }
  0x3e   : > { %449 = vst [vmem:[#allocation2 + $0x28] sm:$0x11] %v448_v11  ;;  %v779_v58 = vshll.u32 %v5399_v9, 16  ;;  %v777_v18 = vshrl.u32 %v5399_v9, 16  ;;  %v4536_v20 = vld [vmem:[%s6360_s3 + $0x6e0] ss:$16 sps:$4 sm:$0xff]  }
  0x3f   : > { %v755_v30 = vshll.u32 %v5309_v26, 16  ;;  %v743_v31 = vshll.u32 %v5311_v27, 16  ;;  %v753_v32 = vshrl.u32 %v5309_v26, 16  ;;  %v741_v34 = vshrl.u32 %v5311_v27, 16  ;;  %v4544_v23 = vld [vmem:[%s6360_s3 + $0x704] ss:$16 sps:$4 sm:$0xff]  }
  0x40   : > { %1461 = vmatpush1.bf16.msra.mxu0 %v4484_v50  ;;  %1547 = vmatpush1.bf16.msra.mxu1 %v4485_v51  ;;  %v454_v36 = vld [vmem:[#allocation2 + $0x20] sm:$0x11]  ;;  %v781_v19 = vrot.slane %v779_v58, 1  ;;  %v4547_v25 = vld [vmem:[%s6360_s3 + $0x70c] ss:$16 sps:$4 sm:$0xff]  }
  0x41   : > { %1462 = vmatprep.subr.bf16.mxu0 %v4486_v55  ;;  %1548 = vmatprep.subr.bf16.mxu1 %v4488_v59  ;;  %v757_v33 = vrot.slane %v755_v30, 1  ;;  %v745_v35 = vrot.slane %v743_v31, 1  ;;  %v5328_v37 = vcombine.high %v454_v36, %v454_v36  ;;  %v5330_v39 = vcombine.low %v454_v36, %v454_v36  ;;  %v4502_v51 = vld [vmem:[%s6360_s3 + $0x624] ss:$16 sps:$4 sm:$0xff]   ;;  %v4509_v59 = vld [vmem:[%s6360_s3 + $0x648] ss:$16 sps:$4 sm:$0xff]  }
  0x42   : > { %v4508_v55 = vld [vmem:[%s6360_s3 + $0x644] ss:$16 sps:$4 sm:$0xff]   ;;  %v782_v28 = vor.u32 %v781_v19, %v777_v18  ;;  %v4542_v31 = vld [vmem:[%s6360_s3 + $0x700] ss:$16 sps:$4 sm:$0xff]   ;;  %v4581_v3 = vld [vmem:[%s6360_s3 + $0x7c8] ss:$16 sps:$4 sm:$0xff]  }
  0x43   : > { %v758_v40 = vor.u32 %v757_v33, %v753_v32  ;;  %v760_v41 = vshll.u32 %v5328_v37, 16  ;;  %v746_v42 = vor.u32 %v745_v35, %v741_v34  ;;  %v748_v44 = vshll.u32 %v5330_v39, 16  ;;  %v4545_v32 = vld [vmem:[%s6360_s3 + $0x708] ss:$16 sps:$4 sm:$0xff]   ;;  %v4550_v34 = vld [vmem:[%s6360_s3 + $0x724] ss:$16 sps:$4 sm:$0xff]  }
  0x44   : > { %1463 = vmatpush1.bf16.msra.mxu0 %v4490_v7  ;;  %1549 = vmatpush1.bf16.msra.mxu1 %v4491_v12  ;;  %v4529_v7 = vld [vmem:[%s6360_s3 + $0x6ac] ss:$16 sps:$4 sm:$0xff]   ;;  %v4527_v12 = vld [vmem:[%s6360_s3 + $0x6a8] ss:$16 sps:$4 sm:$0xff]   ;;  %v4584_v8 = vld [vmem:[%s6360_s3 + $0x7e0] ss:$16 sps:$4 sm:$0xff]  }
  0x45   : > { %1475 = vmatprep.subr.bf16.mxu0 %v4495_v17  ;;  %1561 = vmatprep.subr.bf16.mxu1 %v4498_v21  ;;  %v762_v45 = vrot.slane %v760_v41, 1  ;;  %v750_v46 = vrot.slane %v748_v44, 1  ;;  %v4541_v17 = vld [vmem:[%s6360_s3 + $0x6ec] ss:$16 sps:$4 sm:$0xff]   ;;  %v4539_v21 = vld [vmem:[%s6360_s3 + $0x6e8] ss:$16 sps:$4 sm:$0xff]  }
  0x46   : > { %v455_v22 = vld [vmem:[#allocation2 + $0x28] sm:$0x11]  ;;  %v4591_v58 = vld [vmem:[%s6360_s3] ss:$16 sps:$4 sm:$0xff]  }
  0x47   : > { %v763_v49 = vsel %vm739_vm0, %v758_v40, %v762_v45  ;;  %v751_v50 = vsel %vm739_vm0, %v746_v42, %v750_v46  ;;  %v5441_v24 = vcombine.high %v455_v22, %v455_v22  ;;  %v4553_v35 = vld [vmem:[%s6360_s3 + $0x72c] ss:$16 sps:$4 sm:$0xff]   ;;  %v4548_v40 = vld [vmem:[%s6360_s3 + $0x720] ss:$16 sps:$4 sm:$0xff]   ;;  %v4551_v41 = vld [vmem:[%s6360_s3 + $0x728] ss:$16 sps:$4 sm:$0xff]  }
  0x48   : > { %1464 = vmatprep.mubr.bf16.mxu0 %v763_v49  ;;  %1550 = vmatprep.mubr.bf16.mxu1 %v763_v49  ;;  %v4556_v42 = vld [vmem:[%s6360_s3 + $0x744] ss:$16 sps:$4 sm:$0xff]   ;;  %v4559_v44 = vld [vmem:[%s6360_s3 + $0x74c] ss:$16 sps:$4 sm:$0xff]   ;;  %v4554_v45 = vld [vmem:[%s6360_s3 + $0x740] ss:$16 sps:$4 sm:$0xff]  }
  0x49   : > { %1465 = vmatmul.mubr.bf16.vlgmr.msra.gmra.mrb[0].mxu0 %v751_v50  ;;  %1551 = vmatmul.mubr.bf16.vlgmr.msra.gmra.mrb[0].mxu1 %v751_v50  ;;  %v784_v30 = vshll.u32 %v5441_v24, 16  ;;  %v4557_v46 = vld [vmem:[%s6360_s3 + $0x748] ss:$16 sps:$4 sm:$0xff]   ;;  %v4560_v49 = vld [vmem:[%s6360_s3 + $0x760] ss:$16 sps:$4 sm:$0xff]  }
  0x4a   : > { %1476 = vmatpush1.bf16.msra.mxu0 %v4493_v47  ;;  %1562 = vmatpush1.bf16.msra.mxu1 %v4496_v48  ;;  %v4562_v47 = vld [vmem:[%s6360_s3 + $0x764] ss:$16 sps:$4 sm:$0xff]   ;;  %v4565_v48 = vld [vmem:[%s6360_s3 + $0x76c] ss:$16 sps:$4 sm:$0xff]   ;;  %v4563_v50 = vld [vmem:[%s6360_s3 + $0x768] ss:$16 sps:$4 sm:$0xff]  }
  0x4b   : > { %1477 = vmatprep.subr.bf16.mxu0 %v4502_v51  ;;  %1563 = vmatprep.subr.bf16.mxu1 %v4505_v52  ;;  %v786_v33 = vrot.slane %v784_v30, 1  ;;  %v4568_v51 = vld [vmem:[%s6360_s3 + $0x784] ss:$16 sps:$4 sm:$0xff]   ;;  %v4571_v52 = vld [vmem:[%s6360_s3 + $0x78c] ss:$16 sps:$4 sm:$0xff]  }
  0x4c   : > { %v4598_v18 = vld [vmem:[%s6360_s3 + $0x20] ss:$16 sps:$4 sm:$0xff]   ;;  %v4601_v19 = vld [vmem:[%s6360_s3 + $0x28] ss:$16 sps:$4 sm:$0xff]  }
  0x4d   : > { %v787_v36 = vsel %vm739_vm0, %v782_v28, %v786_v33  ;;  %v4615_v28 = vld [vmem:[%s6360_s3 + $0x6c] ss:$16 sps:$4 sm:$0xff]   ;;  %v4610_v30 = vld [vmem:[%s6360_s3 + $0x60] ss:$16 sps:$4 sm:$0xff]  }
  0x4e   : > { %1478 = vmatpush1.bf16.msra.mxu0 %v4500_v53  ;;  %1564 = vmatpush1.bf16.msra.mxu1 %v4503_v54  ;;  %v4566_v53 = vld [vmem:[%s6360_s3 + $0x780] ss:$16 sps:$4 sm:$0xff]   ;;  %v4569_v54 = vld [vmem:[%s6360_s3 + $0x788] ss:$16 sps:$4 sm:$0xff]   ;;  %v4621_v33 = vld [vmem:[%s6360_s3 + $0x8c] ss:$16 sps:$4 sm:$0xff]  }
  0x4f   : > { %1479 = vmatprep.subr.bf16.mxu0 %v4508_v55  ;;  %1565 = vmatprep.subr.bf16.mxu1 %v4511_v56  ;;  %v4574_v55 = vld [vmem:[%s6360_s3 + $0x7a4] ss:$16 sps:$4 sm:$0xff]   ;;  %v4577_v56 = vld [vmem:[%s6360_s3 + $0x7ac] ss:$16 sps:$4 sm:$0xff]  }
  0x50   : > { %1507 = vmatprep.mubr.bf16.mxu0 %v787_v36  ;;  %1593 = vmatprep.mubr.bf16.mxu1 %v787_v36  ;;  %v4624_v36 = vld [vmem:[%s6360_s3 + $0xa4] ss:$16 sps:$4 sm:$0xff]  }
  0x52   : > { %1480 = vmatpush1.bf16.msra.mxu0 %v4506_v57  ;;  %1566 = vmatpush1.bf16.msra.mxu1 %v4509_v59  ;;  %v4572_v57 = vld [vmem:[%s6360_s3 + $0x7a0] ss:$16 sps:$4 sm:$0xff]   ;;  %v4575_v59 = vld [vmem:[%s6360_s3 + $0x7a8] ss:$16 sps:$4 sm:$0xff]  }
  0x53   : > { %1481 = vmatprep.subr.bf16.mxu0 %v4514_v60  ;;  %1567 = vmatprep.subr.bf16.mxu1 %v4517_v61  ;;  %v5514_v60 = vcombine.low %v455_v22, %v455_v22  ;;  %v767_v61 = vshll.u32 %v5322_v29, 16  ;;  %v4604_v22 = vld [vmem:[%s6360_s3 + $0x40] ss:$16 sps:$4 sm:$0xff]  }
  0x56   : > { %1482 = vmatpush1.bf16.msra.mxu0 %v4512_v62  ;;  %1568 = vmatpush1.bf16.msra.mxu1 %v4515_v63  ;;  %v4580_v62 = vld [vmem:[%s6360_s3 + $0x7c4] ss:$16 sps:$4 sm:$0xff]   ;;  %v4583_v63 = vld [vmem:[%s6360_s3 + $0x7cc] ss:$16 sps:$4 sm:$0xff]  }
  0x57   : > { %1483 = vmatprep.subr.bf16.mxu0 %v4520_v1  ;;  %1569 = vmatprep.subr.bf16.mxu1 %v4523_v2  ;;  %v4578_v1 = vld [vmem:[%s6360_s3 + $0x7c0] ss:$16 sps:$4 sm:$0xff]   ;;  %v765_v2 = vshrl.u32 %v5322_v29, 16 }
  0x5a   : > { %1484 = vmatpush1.bf16.msra.mxu0 %v4518_v4  ;;  %1570 = vmatpush1.bf16.msra.mxu1 %v4521_v5  ;;  %v769_v4 = vrot.slane %v767_v61, 1  ;;  %v772_v5 = vshll.u32 %v5514_v60, 16  ;;  %v4649_v61 = vld [vmem:[%s6360_s3 + $0x128] ss:$16 sps:$4 sm:$0xff]  }
  0x5b   : > { %1485 = vmatprep.subr.bf16.mxu0 %v4526_v6  ;;  %1571 = vmatprep.subr.bf16.mxu1 %v4529_v7  ;;  %v4586_v6 = vld [vmem:[%s6360_s3 + $0x7e4] ss:$16 sps:$4 sm:$0xff]   ;;  %v4589_v7 = vld [vmem:[%s6360_s3 + $0x7ec] ss:$16 sps:$4 sm:$0xff]  }
  0x5c   : > { %v770_v11 = vor.u32 %v769_v4, %v765_v2  ;;  %v4655_v2 = vld [vmem:[%s6360_s3 + $0x148] ss:$16 sps:$4 sm:$0xff]   ;;  %v4663_v4 = vld [vmem:[%s6360_s3 + $0x16c] ss:$16 sps:$4 sm:$0xff]  }
  0x5e   : > { %1486 = vmatpush1.bf16.msra.mxu0 %v4524_v10  ;;  %1572 = vmatpush1.bf16.msra.mxu1 %v4527_v12  ;;  %v4587_v10 = vld [vmem:[%s6360_s3 + $0x7e8] ss:$16 sps:$4 sm:$0xff]   ;;  %v774_v12 = vrot.slane %v772_v5, 1  ;;  %v4658_v5 = vld [vmem:[%s6360_s3 + $0x160] ss:$16 sps:$4 sm:$0xff]  }
  0x5f   : > { %1487 = vmatprep.subr.bf16.mxu0 %v4532_v13  ;;  %1573 = vmatprep.subr.bf16.mxu1 %v4535_v0  ;;  %v4593_v13 = vld [vmem:[%s6360_s3 + $0x4] ss:$16 sps:$4 sm:$0xff]   ;;  %v4596_v0 = vld [vmem:[%s6360_s3 + $0xc] ss:$16 sps:$4 sm:$0xff]  }
  0x62   : > { %1488 = vmatpush1.bf16.msra.mxu0 %v4530_v14  ;;  %1574 = vmatpush1.bf16.msra.mxu1 %v4533_v15  ;;  %v4594_v14 = vld [vmem:[%s6360_s3 + $0x8] ss:$16 sps:$4 sm:$0xff]   ;;  %v775_v15 = vsel %vm739_vm0, %v770_v11, %v774_v12  ;;  %v4672_v12 = vld [vmem:[%s6360_s3 + $0x1a4] ss:$16 sps:$4 sm:$0xff]  }
  0x63   : > { %1489 = vmatprep.subr.bf16.mxu0 %v4538_v16  ;;  %1575 = vmatprep.subr.bf16.mxu1 %v4541_v17  ;;  %v4600_v16 = vld [vmem:[%s6360_s3 + $0x24] ss:$16 sps:$4 sm:$0xff]   ;;  %v4603_v17 = vld [vmem:[%s6360_s3 + $0x2c] ss:$16 sps:$4 sm:$0xff]   ;;  %v4667_v11 = vld [vmem:[%s6360_s3 + $0x188] ss:$16 sps:$4 sm:$0xff]  }
  0x66   : > { %1490 = vmatpush1.bf16.msra.mxu0 %v4536_v20  ;;  %1576 = vmatpush1.bf16.msra.mxu1 %v4539_v21  ;;  %v4606_v20 = vld [vmem:[%s6360_s3 + $0x44] ss:$16 sps:$4 sm:$0xff]   ;;  %v4609_v21 = vld [vmem:[%s6360_s3 + $0x4c] ss:$16 sps:$4 sm:$0xff]  }
  0x67   : > { %1491 = vmatprep.subr.bf16.mxu0 %v4544_v23  ;;  %1577 = vmatprep.subr.bf16.mxu1 %v4547_v25  ;;  %v4607_v23 = vld [vmem:[%s6360_s3 + $0x48] ss:$16 sps:$4 sm:$0xff]   ;;  %v4612_v25 = vld [vmem:[%s6360_s3 + $0x64] ss:$16 sps:$4 sm:$0xff]  }
  0x6a   : > { %1492 = vmatpush1.bf16.msra.mxu0 %v4542_v31  ;;  %1578 = vmatpush1.bf16.msra.mxu1 %v4545_v32  ;;  %v4613_v31 = vld [vmem:[%s6360_s3 + $0x68] ss:$16 sps:$4 sm:$0xff]   ;;  %v4618_v32 = vld [vmem:[%s6360_s3 + $0x84] ss:$16 sps:$4 sm:$0xff]  }
  0x6b   : > { %1493 = vmatprep.subr.bf16.mxu0 %v4550_v34  ;;  %1579 = vmatprep.subr.bf16.mxu1 %v4553_v35  ;;  %v4616_v34 = vld [vmem:[%s6360_s3 + $0x80] ss:$16 sps:$4 sm:$0xff]   ;;  %v4619_v35 = vld [vmem:[%s6360_s3 + $0x88] ss:$16 sps:$4 sm:$0xff]  }
  0x6e   : > { %1494 = vmatpush1.bf16.msra.mxu0 %v4548_v40  ;;  %1580 = vmatpush1.bf16.msra.mxu1 %v4551_v41  ;;  %v4627_v40 = vld [vmem:[%s6360_s3 + $0xac] ss:$16 sps:$4 sm:$0xff]   ;;  %v4622_v41 = vld [vmem:[%s6360_s3 + $0xa0] ss:$16 sps:$4 sm:$0xff]  }
  0x6f   : > { %1495 = vmatprep.subr.bf16.mxu0 %v4556_v42  ;;  %1581 = vmatprep.subr.bf16.mxu1 %v4559_v44  ;;  %v4625_v42 = vld [vmem:[%s6360_s3 + $0xa8] ss:$16 sps:$4 sm:$0xff]   ;;  %v4630_v44 = vld [vmem:[%s6360_s3 + $0xc4] ss:$16 sps:$4 sm:$0xff]  }
  0x72   : > { %1496 = vmatpush1.bf16.msra.mxu0 %v4554_v45  ;;  %1582 = vmatpush1.bf16.msra.mxu1 %v4557_v46  ;;  %v4633_v45 = vld [vmem:[%s6360_s3 + $0xcc] ss:$16 sps:$4 sm:$0xff]   ;;  %v4628_v46 = vld [vmem:[%s6360_s3 + $0xc0] ss:$16 sps:$4 sm:$0xff]  }
  0x73   : > { %1497 = vmatprep.subr.bf16.mxu0 %v4562_v47  ;;  %1583 = vmatprep.subr.bf16.mxu1 %v4565_v48  ;;  %v4631_v47 = vld [vmem:[%s6360_s3 + $0xc8] ss:$16 sps:$4 sm:$0xff]   ;;  %v4636_v48 = vld [vmem:[%s6360_s3 + $0xe4] ss:$16 sps:$4 sm:$0xff]  }
  0x76   : > { %1498 = vmatpush1.bf16.msra.mxu0 %v4560_v49  ;;  %1584 = vmatpush1.bf16.msra.mxu1 %v4563_v50  ;;  %v4639_v49 = vld [vmem:[%s6360_s3 + $0xec] ss:$16 sps:$4 sm:$0xff]   ;;  %v4634_v50 = vld [vmem:[%s6360_s3 + $0xe0] ss:$16 sps:$4 sm:$0xff]  }
  0x77   : > { %1499 = vmatprep.subr.bf16.mxu0 %v4568_v51  ;;  %1585 = vmatprep.subr.bf16.mxu1 %v4571_v52  ;;  %v4637_v51 = vld [vmem:[%s6360_s3 + $0xe8] ss:$16 sps:$4 sm:$0xff]   ;;  %v4642_v52 = vld [vmem:[%s6360_s3 + $0x104] ss:$16 sps:$4 sm:$0xff]  }
  0x7a   : > { %1500 = vmatpush1.bf16.msra.mxu0 %v4566_v53  ;;  %1586 = vmatpush1.bf16.msra.mxu1 %v4569_v54  ;;  %v4645_v53 = vld [vmem:[%s6360_s3 + $0x10c] ss:$16 sps:$4 sm:$0xff]   ;;  %v4640_v54 = vld [vmem:[%s6360_s3 + $0x100] ss:$16 sps:$4 sm:$0xff]  }
  0x7b   : > { %1501 = vmatprep.subr.bf16.mxu0 %v4574_v55  ;;  %1587 = vmatprep.subr.bf16.mxu1 %v4577_v56  ;;  %v4643_v55 = vld [vmem:[%s6360_s3 + $0x108] ss:$16 sps:$4 sm:$0xff]   ;;  %v4648_v56 = vld [vmem:[%s6360_s3 + $0x124] ss:$16 sps:$4 sm:$0xff]  }
  0x7e   : > { %1502 = vmatpush1.bf16.msra.mxu0 %v4572_v57  ;;  %1588 = vmatpush1.bf16.msra.mxu1 %v4575_v59  ;;  %v4651_v57 = vld [vmem:[%s6360_s3 + $0x12c] ss:$16 sps:$4 sm:$0xff]   ;;  %v4646_v59 = vld [vmem:[%s6360_s3 + $0x120] ss:$16 sps:$4 sm:$0xff]  }
  0x7f   : > { %1503 = vmatprep.subr.bf16.mxu0 %v4580_v62  ;;  %1589 = vmatprep.subr.bf16.mxu1 %v4583_v63  ;;  %v4654_v62 = vld [vmem:[%s6360_s3 + $0x144] ss:$16 sps:$4 sm:$0xff]   ;;  %v4657_v63 = vld [vmem:[%s6360_s3 + $0x14c] ss:$16 sps:$4 sm:$0xff]  }
  0x82   : > { %1504 = vmatpush1.bf16.msra.mxu0 %v4578_v1  ;;  %1590 = vmatpush1.bf16.msra.mxu1 %v4581_v3  ;;  %v4652_v1 = vld [vmem:[%s6360_s3 + $0x140] ss:$16 sps:$4 sm:$0xff]   ;;  %v4660_v3 = vld [vmem:[%s6360_s3 + $0x164] ss:$16 sps:$4 sm:$0xff]  }
  0x83   : > { %1505 = vmatprep.subr.bf16.mxu0 %v4586_v6  ;;  %1591 = vmatprep.subr.bf16.mxu1 %v4589_v7  ;;  %v4661_v6 = vld [vmem:[%s6360_s3 + $0x168] ss:$16 sps:$4 sm:$0xff]   ;;  %v4666_v7 = vld [vmem:[%s6360_s3 + $0x184] ss:$16 sps:$4 sm:$0xff]  }
  0x86   : > { %1506 = vmatpush1.bf16.msra.mxu0 %v4584_v8  ;;  %1592 = vmatpush1.bf16.msra.mxu1 %v4587_v10  ;;  %v4669_v8 = vld [vmem:[%s6360_s3 + $0x18c] ss:$16 sps:$4 sm:$0xff]   ;;  %v4664_v10 = vld [vmem:[%s6360_s3 + $0x180] ss:$16 sps:$4 sm:$0xff]  }
  0x87   : > { %2248 = vmatprep.subr.bf16.mxu0 %v4593_v13  ;;  %2334 = vmatprep.subr.bf16.mxu1 %v4596_v0  ;;  %v4675_v13 = vld [vmem:[%s6360_s3 + $0x1ac] ss:$16 sps:$4 sm:$0xff]   ;;  %v4670_v0 = vld [vmem:[%s6360_s3 + $0x1a0] ss:$16 sps:$4 sm:$0xff]  }
  0x89   : > { %1508 = vmatmul.mubr.bf16.vlgmr.msra.gmra.mrb[0].mxu0 %v775_v15  ;;  %1594 = vmatmul.mubr.bf16.vlgmr.msra.gmra.mrb[0].mxu1 %v775_v15  ;;  %v4681_v15 = vld [vmem:[%s6360_s3 + $0x1cc] ss:$16 sps:$4 sm:$0xff]  }
  0x8a   : > { %2249 = vmatpush1.bf16.msra.mxu0 %v4591_v58  ;;  %2335 = vmatpush1.bf16.msra.mxu1 %v4594_v14  ;;  %v4673_v58 = vld [vmem:[%s6360_s3 + $0x1a8] ss:$16 sps:$4 sm:$0xff]   ;;  %v4678_v14 = vld [vmem:[%s6360_s3 + $0x1c4] ss:$16 sps:$4 sm:$0xff]  }
  0x8b   : > { %2250 = vmatprep.subr.bf16.mxu0 %v4600_v16  ;;  %2336 = vmatprep.subr.bf16.mxu1 %v4603_v17  ;;  %v4676_v16 = vld [vmem:[%s6360_s3 + $0x1c0] ss:$16 sps:$4 sm:$0xff]   ;;  %v4679_v17 = vld [vmem:[%s6360_s3 + $0x1c8] ss:$16 sps:$4 sm:$0xff]  }
  0x8c   : > { %2280 = vmatprep.mubr.bf16.mxu0 %v5309_v26  ;;  %2366 = vmatprep.mubr.bf16.mxu1 %v5309_v26 }
  0x8e   : > { %2251 = vmatpush1.bf16.msra.mxu0 %v4598_v18  ;;  %2337 = vmatpush1.bf16.msra.mxu1 %v4601_v19  ;;  %v4684_v18 = vld [vmem:[%s6360_s3 + $0x1e4] ss:$16 sps:$4 sm:$0xff]   ;;  %v4687_v19 = vld [vmem:[%s6360_s3 + $0x1ec] ss:$16 sps:$4 sm:$0xff]  }
  0x8f   : > { %2252 = vmatprep.subr.bf16.mxu0 %v4606_v20  ;;  %2338 = vmatprep.subr.bf16.mxu1 %v4609_v21  ;;  %v4682_v20 = vld [vmem:[%s6360_s3 + $0x1e0] ss:$16 sps:$4 sm:$0xff]   ;;  %v4685_v21 = vld [vmem:[%s6360_s3 + $0x1e8] ss:$16 sps:$4 sm:$0xff]  }
  0x92   : > { %2253 = vmatpush1.bf16.msra.mxu0 %v4604_v22  ;;  %2339 = vmatpush1.bf16.msra.mxu1 %v4607_v23  ;;  %v4690_v22 = vld [vmem:[%s6360_s3 + $0x204] ss:$16 sps:$4 sm:$0xff]   ;;  %v4693_v23 = vld [vmem:[%s6360_s3 + $0x20c] ss:$16 sps:$4 sm:$0xff]  }
  0x93   : > { %2254 = vmatprep.subr.bf16.mxu0 %v4612_v25  ;;  %2340 = vmatprep.subr.bf16.mxu1 %v4615_v28  ;;  %v4688_v25 = vld [vmem:[%s6360_s3 + $0x200] ss:$16 sps:$4 sm:$0xff]   ;;  %v4691_v28 = vld [vmem:[%s6360_s3 + $0x208] ss:$16 sps:$4 sm:$0xff]  }
  0x96   : > { %2255 = vmatpush1.bf16.msra.mxu0 %v4610_v30  ;;  %2341 = vmatpush1.bf16.msra.mxu1 %v4613_v31  ;;  %v4696_v30 = vld [vmem:[%s6360_s3 + $0x224] ss:$16 sps:$4 sm:$0xff]   ;;  %v4699_v31 = vld [vmem:[%s6360_s3 + $0x22c] ss:$16 sps:$4 sm:$0xff]  }
  0x97   : > { %2256 = vmatprep.subr.bf16.mxu0 %v4618_v32  ;;  %2342 = vmatprep.subr.bf16.mxu1 %v4621_v33  ;;  %v4694_v32 = vld [vmem:[%s6360_s3 + $0x220] ss:$16 sps:$4 sm:$0xff]   ;;  %v4697_v33 = vld [vmem:[%s6360_s3 + $0x228] ss:$16 sps:$4 sm:$0xff]  }
  0x9a   : > { %2257 = vmatpush1.bf16.msra.mxu0 %v4616_v34  ;;  %2343 = vmatpush1.bf16.msra.mxu1 %v4619_v35  ;;  %v4702_v34 = vld [vmem:[%s6360_s3 + $0x244] ss:$16 sps:$4 sm:$0xff]   ;;  %v4705_v35 = vld [vmem:[%s6360_s3 + $0x24c] ss:$16 sps:$4 sm:$0xff]  }
  0x9b   : > { %2258 = vmatprep.subr.bf16.mxu0 %v4624_v36  ;;  %2344 = vmatprep.subr.bf16.mxu1 %v4627_v40  ;;  %v4700_v36 = vld [vmem:[%s6360_s3 + $0x240] ss:$16 sps:$4 sm:$0xff]   ;;  %v4703_v40 = vld [vmem:[%s6360_s3 + $0x248] ss:$16 sps:$4 sm:$0xff]  }
  0x9e   : > { %2259 = vmatpush1.bf16.msra.mxu0 %v4622_v41  ;;  %2345 = vmatpush1.bf16.msra.mxu1 %v4625_v42  ;;  %v4708_v41 = vld [vmem:[%s6360_s3 + $0x264] ss:$16 sps:$4 sm:$0xff]   ;;  %v4711_v42 = vld [vmem:[%s6360_s3 + $0x26c] ss:$16 sps:$4 sm:$0xff]  }
  0x9f   : > { %2260 = vmatprep.subr.bf16.mxu0 %v4630_v44  ;;  %2346 = vmatprep.subr.bf16.mxu1 %v4633_v45  ;;  %v4706_v44 = vld [vmem:[%s6360_s3 + $0x260] ss:$16 sps:$4 sm:$0xff]   ;;  %v4709_v45 = vld [vmem:[%s6360_s3 + $0x268] ss:$16 sps:$4 sm:$0xff]  }
  0xa2   : > { %2261 = vmatpush1.bf16.msra.mxu0 %v4628_v46  ;;  %2347 = vmatpush1.bf16.msra.mxu1 %v4631_v47  ;;  %v4714_v46 = vld [vmem:[%s6360_s3 + $0x284] ss:$16 sps:$4 sm:$0xff]   ;;  %v4717_v47 = vld [vmem:[%s6360_s3 + $0x28c] ss:$16 sps:$4 sm:$0xff]  }
  0xa3   : > { %2262 = vmatprep.subr.bf16.mxu0 %v4636_v48  ;;  %2348 = vmatprep.subr.bf16.mxu1 %v4639_v49  ;;  %v4712_v48 = vld [vmem:[%s6360_s3 + $0x280] ss:$16 sps:$4 sm:$0xff]   ;;  %v4715_v49 = vld [vmem:[%s6360_s3 + $0x288] ss:$16 sps:$4 sm:$0xff]  }
  0xa6   : > { %2263 = vmatpush1.bf16.msra.mxu0 %v4634_v50  ;;  %2349 = vmatpush1.bf16.msra.mxu1 %v4637_v51  ;;  %v4720_v50 = vld [vmem:[%s6360_s3 + $0x2a4] ss:$16 sps:$4 sm:$0xff]   ;;  %v4723_v51 = vld [vmem:[%s6360_s3 + $0x2ac] ss:$16 sps:$4 sm:$0xff]  }
  0xa7   : > { %2264 = vmatprep.subr.bf16.mxu0 %v4642_v52  ;;  %2350 = vmatprep.subr.bf16.mxu1 %v4645_v53  ;;  %v4718_v52 = vld [vmem:[%s6360_s3 + $0x2a0] ss:$16 sps:$4 sm:$0xff]   ;;  %v4721_v53 = vld [vmem:[%s6360_s3 + $0x2a8] ss:$16 sps:$4 sm:$0xff]  }
  0xaa   : > { %2265 = vmatpush1.bf16.msra.mxu0 %v4640_v54  ;;  %2351 = vmatpush1.bf16.msra.mxu1 %v4643_v55  ;;  %v4726_v54 = vld [vmem:[%s6360_s3 + $0x2c4] ss:$16 sps:$4 sm:$0xff]   ;;  %v4729_v55 = vld [vmem:[%s6360_s3 + $0x2cc] ss:$16 sps:$4 sm:$0xff]  }
  0xab   : > { %2266 = vmatprep.subr.bf16.mxu0 %v4648_v56  ;;  %2352 = vmatprep.subr.bf16.mxu1 %v4651_v57  ;;  %v4724_v56 = vld [vmem:[%s6360_s3 + $0x2c0] ss:$16 sps:$4 sm:$0xff]   ;;  %v4727_v57 = vld [vmem:[%s6360_s3 + $0x2c8] ss:$16 sps:$4 sm:$0xff]  }
  0xae   : > { %2267 = vmatpush1.bf16.msra.mxu0 %v4646_v59  ;;  %2353 = vmatpush1.bf16.msra.mxu1 %v4649_v61  ;;  %v4732_v59 = vld [vmem:[%s6360_s3 + $0x2e4] ss:$16 sps:$4 sm:$0xff]   ;;  %v4735_v61 = vld [vmem:[%s6360_s3 + $0x2ec] ss:$16 sps:$4 sm:$0xff]  }
  0xaf   : > { %2268 = vmatprep.subr.bf16.mxu0 %v4654_v62  ;;  %2354 = vmatprep.subr.bf16.mxu1 %v4657_v63  ;;  %v4730_v62 = vld [vmem:[%s6360_s3 + $0x2e0] ss:$16 sps:$4 sm:$0xff]   ;;  %v4733_v63 = vld [vmem:[%s6360_s3 + $0x2e8] ss:$16 sps:$4 sm:$0xff]  }
  0xb2   : > { %2269 = vmatpush1.bf16.msra.mxu0 %v4652_v1  ;;  %2355 = vmatpush1.bf16.msra.mxu1 %v4655_v2  ;;  %v4738_v1 = vld [vmem:[%s6360_s3 + $0x304] ss:$16 sps:$4 sm:$0xff]   ;;  %v4741_v2 = vld [vmem:[%s6360_s3 + $0x30c] ss:$16 sps:$4 sm:$0xff]  }
  0xb3   : > { %2270 = vmatprep.subr.bf16.mxu0 %v4660_v3  ;;  %2356 = vmatprep.subr.bf16.mxu1 %v4663_v4  ;;  %v4736_v3 = vld [vmem:[%s6360_s3 + $0x300] ss:$16 sps:$4 sm:$0xff]   ;;  %v4739_v4 = vld [vmem:[%s6360_s3 + $0x308] ss:$16 sps:$4 sm:$0xff]  }
  0xb6   : > { %2271 = vmatpush1.bf16.msra.mxu0 %v4658_v5  ;;  %2357 = vmatpush1.bf16.msra.mxu1 %v4661_v6  ;;  %v4744_v5 = vld [vmem:[%s6360_s3 + $0x324] ss:$16 sps:$4 sm:$0xff]   ;;  %v4747_v6 = vld [vmem:[%s6360_s3 + $0x32c] ss:$16 sps:$4 sm:$0xff]  }
  0xb7   : > { %2272 = vmatprep.subr.bf16.mxu0 %v4666_v7  ;;  %2358 = vmatprep.subr.bf16.mxu1 %v4669_v8  ;;  %v4742_v7 = vld [vmem:[%s6360_s3 + $0x320] ss:$16 sps:$4 sm:$0xff]   ;;  %v4745_v8 = vld [vmem:[%s6360_s3 + $0x328] ss:$16 sps:$4 sm:$0xff]  }
  0xba   : > { %2273 = vmatpush1.bf16.msra.mxu0 %v4664_v10  ;;  %2359 = vmatpush1.bf16.msra.mxu1 %v4667_v11  ;;  %v4750_v10 = vld [vmem:[%s6360_s3 + $0x344] ss:$16 sps:$4 sm:$0xff]   ;;  %v4753_v11 = vld [vmem:[%s6360_s3 + $0x34c] ss:$16 sps:$4 sm:$0xff]  }
  0xbb   : > { %2274 = vmatprep.subr.bf16.mxu0 %v4672_v12  ;;  %2360 = vmatprep.subr.bf16.mxu1 %v4675_v13  ;;  %v4748_v12 = vld [vmem:[%s6360_s3 + $0x340] ss:$16 sps:$4 sm:$0xff]   ;;  %v4751_v13 = vld [vmem:[%s6360_s3 + $0x348] ss:$16 sps:$4 sm:$0xff]  }
  0xbe   : > { %2275 = vmatpush1.bf16.msra.mxu0 %v4670_v0  ;;  %2361 = vmatpush1.bf16.msra.mxu1 %v4673_v58  ;;  %v4756_v0 = vld [vmem:[%s6360_s3 + $0x364] ss:$16 sps:$4 sm:$0xff]   ;;  %v4759_v58 = vld [vmem:[%s6360_s3 + $0x36c] ss:$16 sps:$4 sm:$0xff]  }
  0xbf   : > { %2276 = vmatprep.subr.bf16.mxu0 %v4678_v14  ;;  %2362 = vmatprep.subr.bf16.mxu1 %v4681_v15  ;;  %v4754_v14 = vld [vmem:[%s6360_s3 + $0x360] ss:$16 sps:$4 sm:$0xff]   ;;  %v4757_v15 = vld [vmem:[%s6360_s3 + $0x368] ss:$16 sps:$4 sm:$0xff]  }
  0xc2   : > { %2277 = vmatpush1.bf16.msra.mxu0 %v4676_v16  ;;  %2363 = vmatpush1.bf16.msra.mxu1 %v4679_v17  ;;  %v4762_v16 = vld [vmem:[%s6360_s3 + $0x384] ss:$16 sps:$4 sm:$0xff]   ;;  %v4765_v17 = vld [vmem:[%s6360_s3 + $0x38c] ss:$16 sps:$4 sm:$0xff]  }
  0xc3   : > { %2278 = vmatprep.subr.bf16.mxu0 %v4684_v18  ;;  %2364 = vmatprep.subr.bf16.mxu1 %v4687_v19  ;;  %v4760_v18 = vld [vmem:[%s6360_s3 + $0x380] ss:$16 sps:$4 sm:$0xff]   ;;  %v4763_v19 = vld [vmem:[%s6360_s3 + $0x388] ss:$16 sps:$4 sm:$0xff]  }
  0xc6   : > { %2279 = vmatpush1.bf16.msra.mxu0 %v4682_v20  ;;  %2365 = vmatpush1.bf16.msra.mxu1 %v4685_v21  ;;  %v4768_v20 = vld [vmem:[%s6360_s3 + $0x3a4] ss:$16 sps:$4 sm:$0xff]   ;;  %v4771_v21 = vld [vmem:[%s6360_s3 + $0x3ac] ss:$16 sps:$4 sm:$0xff]  }
  0xc7   : > { %2291 = vmatprep.subr.bf16.mxu0 %v4690_v22  ;;  %2377 = vmatprep.subr.bf16.mxu1 %v4693_v23  ;;  %v4766_v22 = vld [vmem:[%s6360_s3 + $0x3a0] ss:$16 sps:$4 sm:$0xff]   ;;  %v4769_v23 = vld [vmem:[%s6360_s3 + $0x3a8] ss:$16 sps:$4 sm:$0xff]  }
  0xc9   : > { %2281 = vmatmul.mubr.bf16.vlgmr.msra.gmra.mrb[0].mxu0 %v5311_v27  ;;  %2367 = vmatmul.mubr.bf16.vlgmr.msra.gmra.mrb[0].mxu1 %v5311_v27 }
  0xca   : > { %2292 = vmatpush1.bf16.msra.mxu0 %v4688_v25  ;;  %2378 = vmatpush1.bf16.msra.mxu1 %v4691_v28  ;;  %v4774_v25 = vld [vmem:[%s6360_s3 + $0x3c4] ss:$16 sps:$4 sm:$0xff]   ;;  %v4777_v28 = vld [vmem:[%s6360_s3 + $0x3cc] ss:$16 sps:$4 sm:$0xff]  }
  0xcb   : > { %2293 = vmatprep.subr.bf16.mxu0 %v4696_v30  ;;  %2379 = vmatprep.subr.bf16.mxu1 %v4699_v31  ;;  %v4772_v30 = vld [vmem:[%s6360_s3 + $0x3c0] ss:$16 sps:$4 sm:$0xff]   ;;  %v4775_v31 = vld [vmem:[%s6360_s3 + $0x3c8] ss:$16 sps:$4 sm:$0xff]  }
  0xcc   : > { %2323 = vmatprep.mubr.bf16.mxu0 %v5399_v9  ;;  %2409 = vmatprep.mubr.bf16.mxu1 %v5399_v9 }
  0xce   : > { %2294 = vmatpush1.bf16.msra.mxu0 %v4694_v32  ;;  %2380 = vmatpush1.bf16.msra.mxu1 %v4697_v33  ;;  %v4780_v32 = vld [vmem:[%s6360_s3 + $0x3e4] ss:$16 sps:$4 sm:$0xff]   ;;  %v4783_v33 = vld [vmem:[%s6360_s3 + $0x3ec] ss:$16 sps:$4 sm:$0xff]  }
  0xcf   : > { %2295 = vmatprep.subr.bf16.mxu0 %v4702_v34  ;;  %2381 = vmatprep.subr.bf16.mxu1 %v4705_v35  ;;  %v4778_v34 = vld [vmem:[%s6360_s3 + $0x3e0] ss:$16 sps:$4 sm:$0xff]   ;;  %v4781_v35 = vld [vmem:[%s6360_s3 + $0x3e8] ss:$16 sps:$4 sm:$0xff]  }
  0xd2   : > { %2296 = vmatpush1.bf16.msra.mxu0 %v4700_v36  ;;  %2382 = vmatpush1.bf16.msra.mxu1 %v4703_v40  ;;  %v4786_v36 = vld [vmem:[%s6360_s3 + $0x804] ss:$16 sps:$4 sm:$0xff]   ;;  %v4789_v40 = vld [vmem:[%s6360_s3 + $0x80c] ss:$16 sps:$4 sm:$0xff]  }
  0xd3   : > { %2297 = vmatprep.subr.bf16.mxu0 %v4708_v41  ;;  %2383 = vmatprep.subr.bf16.mxu1 %v4711_v42  ;;  %v2553_v41 = vrot.slane %v5309_v26, 1  ;;  %v2554_v42 = vrot.slane %v5328_v37, 1  ;;  %v4795_v26 = vld [vmem:[%s6360_s3 + $0x82c] ss:$16 sps:$4 sm:$0xff]  }
  0xd5   : > { %v2555_v37 = vsel %vm2549_vm1, %v2553_v41, %v2554_v42  ;;  %v4865_v41 = vld [vmem:[%s6360_s3 + $0x9a8] ss:$16 sps:$4 sm:$0xff]   ;;  %v4870_v42 = vld [vmem:[%s6360_s3 + $0x9c4] ss:$16 sps:$4 sm:$0xff]  }
  0xd6   : > { %2298 = vmatpush1.bf16.msra.mxu0 %v4706_v44  ;;  %2384 = vmatpush1.bf16.msra.mxu1 %v4709_v45  ;;  %v4784_v44 = vld [vmem:[%s6360_s3 + $0x800] ss:$16 sps:$4 sm:$0xff]   ;;  %v4787_v45 = vld [vmem:[%s6360_s3 + $0x808] ss:$16 sps:$4 sm:$0xff]  }
  0xd7   : > { %2299 = vmatprep.subr.bf16.mxu0 %v4714_v46  ;;  %2385 = vmatprep.subr.bf16.mxu1 %v4717_v47  ;;  %v4792_v46 = vld [vmem:[%s6360_s3 + $0x824] ss:$16 sps:$4 sm:$0xff]   ;;  %v4790_v47 = vld [vmem:[%s6360_s3 + $0x820] ss:$16 sps:$4 sm:$0xff]  }
  0xda   : > { %2300 = vmatpush1.bf16.msra.mxu0 %v4712_v48  ;;  %2386 = vmatpush1.bf16.msra.mxu1 %v4715_v49  ;;  %v4793_v48 = vld [vmem:[%s6360_s3 + $0x828] ss:$16 sps:$4 sm:$0xff]   ;;  %v4798_v49 = vld [vmem:[%s6360_s3 + $0x844] ss:$16 sps:$4 sm:$0xff]  }
  0xdb   : > { %2301 = vmatprep.subr.bf16.mxu0 %v4720_v50  ;;  %2387 = vmatprep.subr.bf16.mxu1 %v4723_v51  ;;  %v4801_v50 = vld [vmem:[%s6360_s3 + $0x84c] ss:$16 sps:$4 sm:$0xff]   ;;  %v4796_v51 = vld [vmem:[%s6360_s3 + $0x840] ss:$16 sps:$4 sm:$0xff]  }
  0xde   : > { %2302 = vmatpush1.bf16.msra.mxu0 %v4718_v52  ;;  %2388 = vmatpush1.bf16.msra.mxu1 %v4721_v53  ;;  %v4799_v52 = vld [vmem:[%s6360_s3 + $0x848] ss:$16 sps:$4 sm:$0xff]   ;;  %v4804_v53 = vld [vmem:[%s6360_s3 + $0x864] ss:$16 sps:$4 sm:$0xff]  }
  0xdf   : > { %2303 = vmatprep.subr.bf16.mxu0 %v4726_v54  ;;  %2389 = vmatprep.subr.bf16.mxu1 %v4729_v55  ;;  %v4807_v54 = vld [vmem:[%s6360_s3 + $0x86c] ss:$16 sps:$4 sm:$0xff]   ;;  %v4802_v55 = vld [vmem:[%s6360_s3 + $0x860] ss:$16 sps:$4 sm:$0xff]  }
  0xe2   : > { %2304 = vmatpush1.bf16.msra.mxu0 %v4724_v56  ;;  %2390 = vmatpush1.bf16.msra.mxu1 %v4727_v57  ;;  %v4805_v56 = vld [vmem:[%s6360_s3 + $0x868] ss:$16 sps:$4 sm:$0xff]   ;;  %v4810_v57 = vld [vmem:[%s6360_s3 + $0x884] ss:$16 sps:$4 sm:$0xff]  }
  0xe3   : > { %2305 = vmatprep.subr.bf16.mxu0 %v4732_v59  ;;  %2391 = vmatprep.subr.bf16.mxu1 %v4735_v61  ;;  %v4813_v59 = vld [vmem:[%s6360_s3 + $0x88c] ss:$16 sps:$4 sm:$0xff]   ;;  %v4808_v61 = vld [vmem:[%s6360_s3 + $0x880] ss:$16 sps:$4 sm:$0xff]  }
  0xe6   : > { %2306 = vmatpush1.bf16.msra.mxu0 %v4730_v62  ;;  %2392 = vmatpush1.bf16.msra.mxu1 %v4733_v63  ;;  %v4811_v62 = vld [vmem:[%s6360_s3 + $0x888] ss:$16 sps:$4 sm:$0xff]   ;;  %v4816_v63 = vld [vmem:[%s6360_s3 + $0x8a4] ss:$16 sps:$4 sm:$0xff]  }
  0xe7   : > { %2307 = vmatprep.subr.bf16.mxu0 %v4738_v1  ;;  %2393 = vmatprep.subr.bf16.mxu1 %v4741_v2  ;;  %v4819_v1 = vld [vmem:[%s6360_s3 + $0x8ac] ss:$16 sps:$4 sm:$0xff]   ;;  %v4814_v2 = vld [vmem:[%s6360_s3 + $0x8a0] ss:$16 sps:$4 sm:$0xff]  }
  0xea   : > { %2308 = vmatpush1.bf16.msra.mxu0 %v4736_v3  ;;  %2394 = vmatpush1.bf16.msra.mxu1 %v4739_v4  ;;  %v4817_v3 = vld [vmem:[%s6360_s3 + $0x8a8] ss:$16 sps:$4 sm:$0xff]   ;;  %v4822_v4 = vld [vmem:[%s6360_s3 + $0x8c4] ss:$16 sps:$4 sm:$0xff]  }
  0xeb   : > { %2309 = vmatprep.subr.bf16.mxu0 %v4744_v5  ;;  %2395 = vmatprep.subr.bf16.mxu1 %v4747_v6  ;;  %v4825_v5 = vld [vmem:[%s6360_s3 + $0x8cc] ss:$16 sps:$4 sm:$0xff]   ;;  %v4820_v6 = vld [vmem:[%s6360_s3 + $0x8c0] ss:$16 sps:$4 sm:$0xff]  }
  0xee   : > { %2310 = vmatpush1.bf16.msra.mxu0 %v4742_v7  ;;  %2396 = vmatpush1.bf16.msra.mxu1 %v4745_v8  ;;  %v4823_v7 = vld [vmem:[%s6360_s3 + $0x8c8] ss:$16 sps:$4 sm:$0xff]   ;;  %v4828_v8 = vld [vmem:[%s6360_s3 + $0x8e4] ss:$16 sps:$4 sm:$0xff]  }
  0xef   : > { %2311 = vmatprep.subr.bf16.mxu0 %v4750_v10  ;;  %2397 = vmatprep.subr.bf16.mxu1 %v4753_v11  ;;  %v4831_v10 = vld [vmem:[%s6360_s3 + $0x8ec] ss:$16 sps:$4 sm:$0xff]   ;;  %v4826_v11 = vld [vmem:[%s6360_s3 + $0x8e0] ss:$16 sps:$4 sm:$0xff]  }
  0xf2   : > { %2312 = vmatpush1.bf16.msra.mxu0 %v4748_v12  ;;  %2398 = vmatpush1.bf16.msra.mxu1 %v4751_v13  ;;  %v4829_v12 = vld [vmem:[%s6360_s3 + $0x8e8] ss:$16 sps:$4 sm:$0xff]   ;;  %v4834_v13 = vld [vmem:[%s6360_s3 + $0x904] ss:$16 sps:$4 sm:$0xff]  }
  0xf3   : > { %2313 = vmatprep.subr.bf16.mxu0 %v4756_v0  ;;  %2399 = vmatprep.subr.bf16.mxu1 %v4759_v58  ;;  %v4837_v0 = vld [vmem:[%s6360_s3 + $0x90c] ss:$16 sps:$4 sm:$0xff]   ;;  %v4832_v58 = vld [vmem:[%s6360_s3 + $0x900] ss:$16 sps:$4 sm:$0xff]  }
  0xf6   : > { %2314 = vmatpush1.bf16.msra.mxu0 %v4754_v14  ;;  %2400 = vmatpush1.bf16.msra.mxu1 %v4757_v15  ;;  %v4835_v14 = vld [vmem:[%s6360_s3 + $0x908] ss:$16 sps:$4 sm:$0xff]   ;;  %v4840_v15 = vld [vmem:[%s6360_s3 + $0x924] ss:$16 sps:$4 sm:$0xff]  }
  0xf7   : > { %2315 = vmatprep.subr.bf16.mxu0 %v4762_v16  ;;  %2401 = vmatprep.subr.bf16.mxu1 %v4765_v17  ;;  %v4843_v16 = vld [vmem:[%s6360_s3 + $0x92c] ss:$16 sps:$4 sm:$0xff]   ;;  %v4838_v17 = vld [vmem:[%s6360_s3 + $0x920] ss:$16 sps:$4 sm:$0xff]  }
  0xfa   : > { %2316 = vmatpush1.bf16.msra.mxu0 %v4760_v18  ;;  %2402 = vmatpush1.bf16.msra.mxu1 %v4763_v19  ;;  %v4841_v18 = vld [vmem:[%s6360_s3 + $0x928] ss:$16 sps:$4 sm:$0xff]   ;;  %v4846_v19 = vld [vmem:[%s6360_s3 + $0x944] ss:$16 sps:$4 sm:$0xff]  }
  0xfb   : > { %2317 = vmatprep.subr.bf16.mxu0 %v4768_v20  ;;  %2403 = vmatprep.subr.bf16.mxu1 %v4771_v21  ;;  %v4849_v20 = vld [vmem:[%s6360_s3 + $0x94c] ss:$16 sps:$4 sm:$0xff]   ;;  %v4844_v21 = vld [vmem:[%s6360_s3 + $0x940] ss:$16 sps:$4 sm:$0xff]  }
  0xfe   : > { %2318 = vmatpush1.bf16.msra.mxu0 %v4766_v22  ;;  %2404 = vmatpush1.bf16.msra.mxu1 %v4769_v23  ;;  %v4847_v22 = vld [vmem:[%s6360_s3 + $0x948] ss:$16 sps:$4 sm:$0xff]   ;;  %v4852_v23 = vld [vmem:[%s6360_s3 + $0x964] ss:$16 sps:$4 sm:$0xff]  }
  0xff   : > { %2319 = vmatprep.subr.bf16.mxu0 %v4774_v25  ;;  %2405 = vmatprep.subr.bf16.mxu1 %v4777_v28  ;;  %v4855_v25 = vld [vmem:[%s6360_s3 + $0x96c] ss:$16 sps:$4 sm:$0xff]   ;;  %v4850_v28 = vld [vmem:[%s6360_s3 + $0x960] ss:$16 sps:$4 sm:$0xff]  }
 0x102   : > { %2320 = vmatpush1.bf16.msra.mxu0 %v4772_v30  ;;  %2406 = vmatpush1.bf16.msra.mxu1 %v4775_v31  ;;  %v4853_v30 = vld [vmem:[%s6360_s3 + $0x968] ss:$16 sps:$4 sm:$0xff]   ;;  %v4858_v31 = vld [vmem:[%s6360_s3 + $0x984] ss:$16 sps:$4 sm:$0xff]  }
 0x103   : > { %2321 = vmatprep.subr.bf16.mxu0 %v4780_v32  ;;  %2407 = vmatprep.subr.bf16.mxu1 %v4783_v33  ;;  %v4861_v32 = vld [vmem:[%s6360_s3 + $0x98c] ss:$16 sps:$4 sm:$0xff]   ;;  %v4856_v33 = vld [vmem:[%s6360_s3 + $0x980] ss:$16 sps:$4 sm:$0xff]  }
 0x106   : > { %2322 = vmatpush1.bf16.msra.mxu0 %v4778_v34  ;;  %2408 = vmatpush1.bf16.msra.mxu1 %v4781_v35  ;;  %v4859_v34 = vld [vmem:[%s6360_s3 + $0x988] ss:$16 sps:$4 sm:$0xff]   ;;  %v4864_v35 = vld [vmem:[%s6360_s3 + $0x9a4] ss:$16 sps:$4 sm:$0xff]  }
 0x107   : > { %3206 = vmatprep.subr.bf16.mxu0 %v4786_v36  ;;  %3292 = vmatprep.subr.bf16.mxu1 %v4789_v40  ;;  %v4867_v36 = vld [vmem:[%s6360_s3 + $0x9ac] ss:$16 sps:$4 sm:$0xff]   ;;  %v4862_v40 = vld [vmem:[%s6360_s3 + $0x9a0] ss:$16 sps:$4 sm:$0xff]  }
 0x109   : > { %2324 = vmatmul.mubr.bf16.vlgmr.msra.gmra.mrb[0].mxu0 %v5322_v29  ;;  %2410 = vmatmul.mubr.bf16.vlgmr.msra.gmra.mrb[0].mxu1 %v5322_v29 }
 0x10a   : > { %3207 = vmatpush1.bf16.msra.mxu0 %v4784_v44  ;;  %3293 = vmatpush1.bf16.msra.mxu1 %v4787_v45  ;;  %v4873_v44 = vld [vmem:[%s6360_s3 + $0x9cc] ss:$16 sps:$4 sm:$0xff]   ;;  %v4868_v45 = vld [vmem:[%s6360_s3 + $0x9c0] ss:$16 sps:$4 sm:$0xff]  }
 0x10b   : > { %3208 = vmatprep.subr.bf16.mxu0 %v4792_v46  ;;  %3294 = vmatprep.subr.bf16.mxu1 %v4795_v26  ;;  %v4871_v46 = vld [vmem:[%s6360_s3 + $0x9c8] ss:$16 sps:$4 sm:$0xff]   ;;  %v4876_v26 = vld [vmem:[%s6360_s3 + $0x9e4] ss:$16 sps:$4 sm:$0xff]  }
 0x10c   : > { %3238 = vmatprep.mubr.bf16.mxu0 %v2555_v37  ;;  %3324 = vmatprep.mubr.bf16.mxu1 %v2555_v37  ;;  %v4879_v37 = vld [vmem:[%s6360_s3 + $0x9ec] ss:$16 sps:$4 sm:$0xff]  }
 0x10e   : > { %3209 = vmatpush1.bf16.msra.mxu0 %v4790_v47  ;;  %3295 = vmatpush1.bf16.msra.mxu1 %v4793_v48  ;;  %v4874_v47 = vld [vmem:[%s6360_s3 + $0x9e0] ss:$16 sps:$4 sm:$0xff]   ;;  %v4877_v48 = vld [vmem:[%s6360_s3 + $0x9e8] ss:$16 sps:$4 sm:$0xff]  }
 0x10f   : > { %3210 = vmatprep.subr.bf16.mxu0 %v4798_v49  ;;  %3296 = vmatprep.subr.bf16.mxu1 %v4801_v50  ;;  %v2550_v49 = vrot.slane %v5311_v27, 1  ;;  %v2551_v50 = vrot.slane %v5330_v39, 1  ;;  %v4880_v27 = vld [vmem:[%s6360_s3 + $0xa00] ss:$16 sps:$4 sm:$0xff]   ;;  %v4883_v39 = vld [vmem:[%s6360_s3 + $0xa08] ss:$16 sps:$4 sm:$0xff]  }
 0x112   : > { %3211 = vmatpush1.bf16.msra.mxu0 %v4796_v51  ;;  %3297 = vmatpush1.bf16.msra.mxu1 %v4799_v52  ;;  %v4882_v51 = vld [vmem:[%s6360_s3 + $0xa04] ss:$16 sps:$4 sm:$0xff]   ;;  %v4885_v52 = vld [vmem:[%s6360_s3 + $0xa0c] ss:$16 sps:$4 sm:$0xff]  }
 0x113   : > { %3212 = vmatprep.subr.bf16.mxu0 %v4804_v53  ;;  %3298 = vmatprep.subr.bf16.mxu1 %v4807_v54  ;;  %v2559_v53 = vrot.slane %v5399_v9, 1  ;;  %v2560_v54 = vrot.slane %v5441_v24, 1  ;;  %v4888_v9 = vld [vmem:[%s6360_s3 + $0xa24] ss:$16 sps:$4 sm:$0xff]   ;;  %v4891_v24 = vld [vmem:[%s6360_s3 + $0xa2c] ss:$16 sps:$4 sm:$0xff]  }
 0x116   : > { %3213 = vmatpush1.bf16.msra.mxu0 %v4802_v55  ;;  %3299 = vmatpush1.bf16.msra.mxu1 %v4805_v56  ;;  %v2552_v55 = vsel %vm2549_vm1, %v2550_v49, %v2551_v50  ;;  %v2561_v56 = vsel %vm2549_vm1, %v2559_v53, %v2560_v54  ;;  %v4958_v49 = vld [vmem:[%s6360_s3 + $0xba0] ss:$16 sps:$4 sm:$0xff]   ;;  %v4961_v50 = vld [vmem:[%s6360_s3 + $0xba8] ss:$16 sps:$4 sm:$0xff]  }
 0x117   : > { %3214 = vmatprep.subr.bf16.mxu0 %v4810_v57  ;;  %3300 = vmatprep.subr.bf16.mxu1 %v4813_v59  ;;  %v4886_v57 = vld [vmem:[%s6360_s3 + $0xa20] ss:$16 sps:$4 sm:$0xff]   ;;  %v4889_v59 = vld [vmem:[%s6360_s3 + $0xa28] ss:$16 sps:$4 sm:$0xff]  }
 0x118   : > { %v4964_v53 = vld [vmem:[%s6360_s3 + $0xbc0] ss:$16 sps:$4 sm:$0xff]   ;;  %v4967_v54 = vld [vmem:[%s6360_s3 + $0xbc8] ss:$16 sps:$4 sm:$0xff]  }
 0x11a   : > { %3215 = vmatpush1.bf16.msra.mxu0 %v4808_v61  ;;  %3301 = vmatpush1.bf16.msra.mxu1 %v4811_v62  ;;  %v4894_v61 = vld [vmem:[%s6360_s3 + $0xa44] ss:$16 sps:$4 sm:$0xff]   ;;  %v4897_v62 = vld [vmem:[%s6360_s3 + $0xa4c] ss:$16 sps:$4 sm:$0xff]  }
 0x11b   : > { %3216 = vmatprep.subr.bf16.mxu0 %v4816_v63  ;;  %3302 = vmatprep.subr.bf16.mxu1 %v4819_v1  ;;  %v4892_v63 = vld [vmem:[%s6360_s3 + $0xa40] ss:$16 sps:$4 sm:$0xff]   ;;  %v4895_v1 = vld [vmem:[%s6360_s3 + $0xa48] ss:$16 sps:$4 sm:$0xff]  }
 0x11e   : > { %3217 = vmatpush1.bf16.msra.mxu0 %v4814_v2  ;;  %3303 = vmatpush1.bf16.msra.mxu1 %v4817_v3  ;;  %v4900_v2 = vld [vmem:[%s6360_s3 + $0xa64] ss:$16 sps:$4 sm:$0xff]   ;;  %v4903_v3 = vld [vmem:[%s6360_s3 + $0xa6c] ss:$16 sps:$4 sm:$0xff]  }
 0x11f   : > { %3218 = vmatprep.subr.bf16.mxu0 %v4822_v4  ;;  %3304 = vmatprep.subr.bf16.mxu1 %v4825_v5  ;;  %v4898_v4 = vld [vmem:[%s6360_s3 + $0xa60] ss:$16 sps:$4 sm:$0xff]   ;;  %v4901_v5 = vld [vmem:[%s6360_s3 + $0xa68] ss:$16 sps:$4 sm:$0xff]  }
 0x122   : > { %3219 = vmatpush1.bf16.msra.mxu0 %v4820_v6  ;;  %3305 = vmatpush1.bf16.msra.mxu1 %v4823_v7  ;;  %v4906_v6 = vld [vmem:[%s6360_s3 + $0xa84] ss:$16 sps:$4 sm:$0xff]   ;;  %v4909_v7 = vld [vmem:[%s6360_s3 + $0xa8c] ss:$16 sps:$4 sm:$0xff]  }
 0x123   : > { %3220 = vmatprep.subr.bf16.mxu0 %v4828_v8  ;;  %3306 = vmatprep.subr.bf16.mxu1 %v4831_v10  ;;  %v4904_v8 = vld [vmem:[%s6360_s3 + $0xa80] ss:$16 sps:$4 sm:$0xff]   ;;  %v4907_v10 = vld [vmem:[%s6360_s3 + $0xa88] ss:$16 sps:$4 sm:$0xff]  }
 0x126   : > { %3221 = vmatpush1.bf16.msra.mxu0 %v4826_v11  ;;  %3307 = vmatpush1.bf16.msra.mxu1 %v4829_v12  ;;  %v4912_v11 = vld [vmem:[%s6360_s3 + $0xaa4] ss:$16 sps:$4 sm:$0xff]   ;;  %v4915_v12 = vld [vmem:[%s6360_s3 + $0xaac] ss:$16 sps:$4 sm:$0xff]  }
 0x127   : > { %3222 = vmatprep.subr.bf16.mxu0 %v4834_v13  ;;  %3308 = vmatprep.subr.bf16.mxu1 %v4837_v0  ;;  %v4910_v13 = vld [vmem:[%s6360_s3 + $0xaa0] ss:$16 sps:$4 sm:$0xff]   ;;  %v4913_v0 = vld [vmem:[%s6360_s3 + $0xaa8] ss:$16 sps:$4 sm:$0xff]  }
 0x12a   : > { %3223 = vmatpush1.bf16.msra.mxu0 %v4832_v58  ;;  %3309 = vmatpush1.bf16.msra.mxu1 %v4835_v14  ;;  %v4918_v58 = vld [vmem:[%s6360_s3 + $0xac4] ss:$16 sps:$4 sm:$0xff]   ;;  %v4921_v14 = vld [vmem:[%s6360_s3 + $0xacc] ss:$16 sps:$4 sm:$0xff]  }
 0x12b   : > { %3224 = vmatprep.subr.bf16.mxu0 %v4840_v15  ;;  %3310 = vmatprep.subr.bf16.mxu1 %v4843_v16  ;;  %v4916_v15 = vld [vmem:[%s6360_s3 + $0xac0] ss:$16 sps:$4 sm:$0xff]   ;;  %v4919_v16 = vld [vmem:[%s6360_s3 + $0xac8] ss:$16 sps:$4 sm:$0xff]  }
 0x12e   : > { %3225 = vmatpush1.bf16.msra.mxu0 %v4838_v17  ;;  %3311 = vmatpush1.bf16.msra.mxu1 %v4841_v18  ;;  %v4924_v17 = vld [vmem:[%s6360_s3 + $0xae4] ss:$16 sps:$4 sm:$0xff]   ;;  %v4927_v18 = vld [vmem:[%s6360_s3 + $0xaec] ss:$16 sps:$4 sm:$0xff]  }
 0x12f   : > { %3226 = vmatprep.subr.bf16.mxu0 %v4846_v19  ;;  %3312 = vmatprep.subr.bf16.mxu1 %v4849_v20  ;;  %v4922_v19 = vld [vmem:[%s6360_s3 + $0xae0] ss:$16 sps:$4 sm:$0xff]   ;;  %v4925_v20 = vld [vmem:[%s6360_s3 + $0xae8] ss:$16 sps:$4 sm:$0xff]  }
 0x132   : > { %3227 = vmatpush1.bf16.msra.mxu0 %v4844_v21  ;;  %3313 = vmatpush1.bf16.msra.mxu1 %v4847_v22  ;;  %v4930_v21 = vld [vmem:[%s6360_s3 + $0xb04] ss:$16 sps:$4 sm:$0xff]   ;;  %v4933_v22 = vld [vmem:[%s6360_s3 + $0xb0c] ss:$16 sps:$4 sm:$0xff]  }
 0x133   : > { %3228 = vmatprep.subr.bf16.mxu0 %v4852_v23  ;;  %3314 = vmatprep.subr.bf16.mxu1 %v4855_v25  ;;  %v4928_v23 = vld [vmem:[%s6360_s3 + $0xb00] ss:$16 sps:$4 sm:$0xff]   ;;  %v4931_v25 = vld [vmem:[%s6360_s3 + $0xb08] ss:$16 sps:$4 sm:$0xff]  }
 0x136   : > { %3229 = vmatpush1.bf16.msra.mxu0 %v4850_v28  ;;  %3315 = vmatpush1.bf16.msra.mxu1 %v4853_v30  ;;  %v4936_v28 = vld [vmem:[%s6360_s3 + $0xb24] ss:$16 sps:$4 sm:$0xff]   ;;  %v4939_v30 = vld [vmem:[%s6360_s3 + $0xb2c] ss:$16 sps:$4 sm:$0xff]  }
 0x137   : > { %3230 = vmatprep.subr.bf16.mxu0 %v4858_v31  ;;  %3316 = vmatprep.subr.bf16.mxu1 %v4861_v32  ;;  %v4934_v31 = vld [vmem:[%s6360_s3 + $0xb20] ss:$16 sps:$4 sm:$0xff]   ;;  %v4937_v32 = vld [vmem:[%s6360_s3 + $0xb28] ss:$16 sps:$4 sm:$0xff]  }
 0x13a   : > { %3231 = vmatpush1.bf16.msra.mxu0 %v4856_v33  ;;  %3317 = vmatpush1.bf16.msra.mxu1 %v4859_v34  ;;  %v4942_v33 = vld [vmem:[%s6360_s3 + $0xb44] ss:$16 sps:$4 sm:$0xff]   ;;  %v4945_v34 = vld [vmem:[%s6360_s3 + $0xb4c] ss:$16 sps:$4 sm:$0xff]  }
 0x13b   : > { %3232 = vmatprep.subr.bf16.mxu0 %v4864_v35  ;;  %3318 = vmatprep.subr.bf16.mxu1 %v4867_v36  ;;  %v4940_v35 = vld [vmem:[%s6360_s3 + $0xb40] ss:$16 sps:$4 sm:$0xff]   ;;  %v4943_v36 = vld [vmem:[%s6360_s3 + $0xb48] ss:$16 sps:$4 sm:$0xff]  }
 0x13e   : > { %3233 = vmatpush1.bf16.msra.mxu0 %v4862_v40  ;;  %3319 = vmatpush1.bf16.msra.mxu1 %v4865_v41  ;;  %v4948_v40 = vld [vmem:[%s6360_s3 + $0xb64] ss:$16 sps:$4 sm:$0xff]   ;;  %v4951_v41 = vld [vmem:[%s6360_s3 + $0xb6c] ss:$16 sps:$4 sm:$0xff]  }
 0x13f   : > { %3234 = vmatprep.subr.bf16.mxu0 %v4870_v42  ;;  %3320 = vmatprep.subr.bf16.mxu1 %v4873_v44  ;;  %v4946_v42 = vld [vmem:[%s6360_s3 + $0xb60] ss:$16 sps:$4 sm:$0xff]   ;;  %v4949_v44 = vld [vmem:[%s6360_s3 + $0xb68] ss:$16 sps:$4 sm:$0xff]  }
 0x142   : > { %3235 = vmatpush1.bf16.msra.mxu0 %v4868_v45  ;;  %3321 = vmatpush1.bf16.msra.mxu1 %v4871_v46  ;;  %v4954_v45 = vld [vmem:[%s6360_s3 + $0xb84] ss:$16 sps:$4 sm:$0xff]   ;;  %v4957_v46 = vld [vmem:[%s6360_s3 + $0xb8c] ss:$16 sps:$4 sm:$0xff]  }
 0x143   : > { %3236 = vmatprep.subr.bf16.mxu0 %v4876_v26  ;;  %3322 = vmatprep.subr.bf16.mxu1 %v4879_v37  ;;  %v4952_v26 = vld [vmem:[%s6360_s3 + $0xb80] ss:$16 sps:$4 sm:$0xff]   ;;  %v4955_v37 = vld [vmem:[%s6360_s3 + $0xb88] ss:$16 sps:$4 sm:$0xff]  }
 0x146   : > { %3237 = vmatpush1.bf16.msra.mxu0 %v4874_v47  ;;  %3323 = vmatpush1.bf16.msra.mxu1 %v4877_v48  ;;  %v4960_v47 = vld [vmem:[%s6360_s3 + $0xba4] ss:$16 sps:$4 sm:$0xff]   ;;  %v4963_v48 = vld [vmem:[%s6360_s3 + $0xbac] ss:$16 sps:$4 sm:$0xff]  }
 0x147   : > { %3249 = vmatprep.subr.bf16.mxu0 %v4882_v51  ;;  %3335 = vmatprep.subr.bf16.mxu1 %v4885_v52  ;;  %v4966_v51 = vld [vmem:[%s6360_s3 + $0xbc4] ss:$16 sps:$4 sm:$0xff]   ;;  %v4969_v52 = vld [vmem:[%s6360_s3 + $0xbcc] ss:$16 sps:$4 sm:$0xff]  }
 0x149   : > { %3239 = vmatmul.mubr.bf16.vlgmr.msra.gmra.mrb[0].mxu0 %v2552_v55  ;;  %3325 = vmatmul.mubr.bf16.vlgmr.msra.gmra.mrb[0].mxu1 %v2552_v55  ;;  %v4970_v55 = vld [vmem:[%s6360_s3 + $0xbe0] ss:$16 sps:$4 sm:$0xff]  }
 0x14a   : > { %3250 = vmatpush1.bf16.msra.mxu0 %v4880_v27  ;;  %3336 = vmatpush1.bf16.msra.mxu1 %v4883_v39  ;;  %v4972_v27 = vld [vmem:[%s6360_s3 + $0xbe4] ss:$16 sps:$4 sm:$0xff]   ;;  %v4975_v39 = vld [vmem:[%s6360_s3 + $0xbec] ss:$16 sps:$4 sm:$0xff]  }
 0x14b   : > { %3251 = vmatprep.subr.bf16.mxu0 %v4888_v9  ;;  %3337 = vmatprep.subr.bf16.mxu1 %v4891_v24  ;;  %v4973_v9 = vld [vmem:[%s6360_s3 + $0xbe8] ss:$16 sps:$4 sm:$0xff]   ;;  %v2556_v24 = vrot.slane %v5322_v29, 1 }
 0x14c   : > { %3281 = vmatprep.mubr.bf16.mxu0 %v2561_v56  ;;  %3367 = vmatprep.mubr.bf16.mxu1 %v2561_v56  ;;  %v2557_v56 = vrot.slane %v5514_v60, 1 }
 0x14e   : > { %3252 = vmatpush1.bf16.msra.mxu0 %v4886_v57  ;;  %3338 = vmatpush1.bf16.msra.mxu1 %v4889_v59  ;;  %v2558_v57 = vsel %vm2549_vm1, %v2556_v24, %v2557_v56  ;;  %v4985_v59 = vmov 1966171168  }
 0x14f   : > { %3253 = vmatprep.subr.bf16.mxu0 %v4894_v61  ;;  %3339 = vmatprep.subr.bf16.mxu1 %v4897_v62  ;;  %v3493_v61 = vunpack.c.l.s4 %v4985_v59 }
 0x151   : > { %v3494_v62 = vunpack.c.0.s8 %v3493_v61 }
 0x152   : > { %3254 = vmatpush1.bf16.msra.mxu0 %v4892_v63  ;;  %3340 = vmatpush1.bf16.msra.mxu1 %v4895_v1 }
 0x153   : > { %3255 = vmatprep.subr.bf16.mxu0 %v4900_v2  ;;  %3341 = vmatprep.subr.bf16.mxu1 %v4903_v3 }
 0x156   : > { %3256 = vmatpush1.bf16.msra.mxu0 %v4898_v4  ;;  %3342 = vmatpush1.bf16.msra.mxu1 %v4901_v5  ;;  %v6338_v4 = vsub.s32 %v3494_v62, %v5159_v43 }
 0x157   : > { %3257 = vmatprep.subr.bf16.mxu0 %v4906_v6  ;;  %3343 = vmatprep.subr.bf16.mxu1 %v4909_v7 }
 0x15a   : > { %3258 = vmatpush1.bf16.msra.mxu0 %v4904_v8  ;;  %3344 = vmatpush1.bf16.msra.mxu1 %v4907_v10 }
 0x15b   : > { %3259 = vmatprep.subr.bf16.mxu0 %v4912_v11  ;;  %3345 = vmatprep.subr.bf16.mxu1 %v4915_v12 }
 0x15e   : > { %3260 = vmatpush1.bf16.msra.mxu0 %v4910_v13  ;;  %3346 = vmatpush1.bf16.msra.mxu1 %v4913_v0 }
 0x15f   : > { %3261 = vmatprep.subr.bf16.mxu0 %v4918_v58  ;;  %3347 = vmatprep.subr.bf16.mxu1 %v4921_v14 }
 0x162   : > { %3262 = vmatpush1.bf16.msra.mxu0 %v4916_v15  ;;  %3348 = vmatpush1.bf16.msra.mxu1 %v4919_v16 }
 0x163   : > { %3263 = vmatprep.subr.bf16.mxu0 %v4924_v17  ;;  %3349 = vmatprep.subr.bf16.mxu1 %v4927_v18 }
 0x166   : > { %3264 = vmatpush1.bf16.msra.mxu0 %v4922_v19  ;;  %3350 = vmatpush1.bf16.msra.mxu1 %v4925_v20 }
 0x167   : > { %3265 = vmatprep.subr.bf16.mxu0 %v4930_v21  ;;  %3351 = vmatprep.subr.bf16.mxu1 %v4933_v22 }
 0x16a   : > { %3266 = vmatpush1.bf16.msra.mxu0 %v4928_v23  ;;  %3352 = vmatpush1.bf16.msra.mxu1 %v4931_v25 }
 0x16b   : > { %3267 = vmatprep.subr.bf16.mxu0 %v4936_v28  ;;  %3353 = vmatprep.subr.bf16.mxu1 %v4939_v30 }
 0x16e   : > { %3268 = vmatpush1.bf16.msra.mxu0 %v4934_v31  ;;  %3354 = vmatpush1.bf16.msra.mxu1 %v4937_v32 }
 0x16f   : > { %3269 = vmatprep.subr.bf16.mxu0 %v4942_v33  ;;  %3355 = vmatprep.subr.bf16.mxu1 %v4945_v34 }
 0x172   : > { %3270 = vmatpush1.bf16.msra.mxu0 %v4940_v35  ;;  %3356 = vmatpush1.bf16.msra.mxu1 %v4943_v36 }
 0x173   : > { %3271 = vmatprep.subr.bf16.mxu0 %v4948_v40  ;;  %3357 = vmatprep.subr.bf16.mxu1 %v4951_v41 }
 0x176   : > { %3272 = vmatpush1.bf16.msra.mxu0 %v4946_v42  ;;  %3358 = vmatpush1.bf16.msra.mxu1 %v4949_v44 }
 0x177   : > { %3273 = vmatprep.subr.bf16.mxu0 %v4954_v45  ;;  %3359 = vmatprep.subr.bf16.mxu1 %v4957_v46 }
 0x17a   : > { %3274 = vmatpush1.bf16.msra.mxu0 %v4952_v26  ;;  %3360 = vmatpush1.bf16.msra.mxu1 %v4955_v37 }
 0x17b   : > { %3275 = vmatprep.subr.bf16.mxu0 %v4960_v47  ;;  %3361 = vmatprep.subr.bf16.mxu1 %v4963_v48 }
 0x17e   : > { %3276 = vmatpush1.bf16.msra.mxu0 %v4958_v49  ;;  %3362 = vmatpush1.bf16.msra.mxu1 %v4961_v50 }
 0x17f   : > { %3277 = vmatprep.subr.bf16.mxu0 %v4966_v51  ;;  %3363 = vmatprep.subr.bf16.mxu1 %v4969_v52 }
 0x182   : > { %3278 = vmatpush1.bf16.msra.mxu0 %v4964_v53  ;;  %3364 = vmatpush1.bf16.msra.mxu1 %v4967_v54 }
 0x183   : > { %3279 = vmatprep.subr.bf16.mxu0 %v4972_v27  ;;  %3365 = vmatprep.subr.bf16.mxu1 %v4975_v39 }
 0x186   : > { %3280 = vmatpush1.bf16.msra.mxu0 %v4970_v55  ;;  %3366 = vmatpush1.bf16.msra.mxu1 %v4973_v9 }
 0x189   : > { %3282 = vmatmul.mubr.bf16.vlgmr.msra.gmra.mrb[0].mxu0 %v2558_v57  ;;  %3368 = vmatmul.mubr.bf16.vlgmr.msra.gmra.mrb[0].mxu1 %v2558_v57 }
 0x25c   : > { %v3283_v63 = vpop.f32.mrb[0].mxu0  ;;  %v3369_v1 = vpop.f32.mrb[0].mxu1 }
 0x25d   : > { %v3446_v2 = vmul.f32 %v3283_v63, %v3283_v63  ;;  %v3448_v3 = vmul.f32 %v3369_v1, %v3369_v1  ;;  %v3285_v29 = vpop.f32.mrb[1].mxu0  ;;  %v3371_v60 = vpop.f32.mrb[1].mxu1 }
 0x25e   : > { %v4342_v5 = vpack.c.bf16 %v3285_v29, %v3283_v63  ;;  %v3447_v6 = vmul.f32 %v3285_v29, %v3285_v29  ;;  %v4343_v7 = vpack.c.bf16 %v3371_v60, %v3369_v1  ;;  %v3449_v8 = vmul.f32 %v3371_v60, %v3371_v60  ;;  %v3287_v10 = vpop.f32.mrb[2].mxu0  ;;  %v3373_v11 = vpop.f32.mrb[2].mxu1 }
 0x25f   : > { %v3414_v12 = vadd.f32 %v3287_v10, %v3283_v63  ;;  %v3450_v13 = vmul.f32 %v3287_v10, %v3287_v10  ;;  %v3428_v0 = vadd.f32 %v3373_v11, %v3369_v1  ;;  %v3452_v58 = vmul.f32 %v3373_v11, %v3373_v11  ;;  %v3289_v14 = vpop.f32.mrb[3].mxu0  ;;  %v3375_v15 = vpop.f32.mrb[3].mxu1 }
 0x260   : > { %3410 = vst [vmem:[%s264_s18] sm:$0xff] %v4342_v5  ;;  %3411 = vst [vmem:[%s264_s18 + $0x8] sm:$0xff] %v4343_v7  ;;  %v4344_v16 = vpack.c.bf16 %v3289_v14, %v3287_v10  ;;  %v3421_v17 = vadd.f32 %v3289_v14, %v3285_v29  ;;  %v3451_v18 = vmul.f32 %v3289_v14, %v3289_v14 }
 0x261   : > { %v4345_v19 = vpack.c.bf16 %v3375_v15, %v3373_v11  ;;  %v3415_v43 = vrot.slane %v3414_v12, 4  ;;  %v3454_v20 = vadd.f32 %v3450_v13, %v3446_v2  ;;  %v3429_v21 = vrot.slane %v3428_v0, 4 }
 0x262   : > { %v3468_v22 = vadd.f32 %v3452_v58, %v3448_v3  ;;  %3412 = vst [vmem:[%s264_s18 + $0x10] sm:$0xff] %v4344_v16  ;;  %v3422_v23 = vrot.slane %v3421_v17, 4  ;;  %v3461_v25 = vadd.f32 %v3451_v18, %v3447_v6  ;;  %v3435_v28 = vadd.f32 %v3375_v15, %v3371_v60 }
 0x263   : > { %3413 = vst [vmem:[%s264_s18 + $0x18] sm:$0xff] %v4345_v19  ;;  %v3453_v30 = vmul.f32 %v3375_v15, %v3375_v15  ;;  %v3416_v31 = vadd.f32 %v3415_v43, %v3414_v12  ;;  %v3455_v32 = vrot.slane %v3454_v20, 4  ;;  %v3430_v33 = vadd.f32 %v3429_v21, %v3428_v0 }
 0x264   : > { %v3469_v34 = vrot.slane %v3468_v22, 4  ;;  %v3423_v35 = vadd.f32 %v3422_v23, %v3421_v17  ;;  %v3462_v36 = vrot.slane %v3461_v25, 4  ;;  %v3436_v40 = vrot.slane %v3435_v28, 4 }
 0x265   : > { %v3475_v41 = vadd.f32 %v3453_v30, %v3449_v8  ;;  %v3417_v42 = vrot.slane %v3416_v31, 2  ;;  %v3456_v44 = vadd.f32 %v3455_v32, %v3454_v20  ;;  %v3431_v45 = vrot.slane %v3430_v33, 2 }
 0x266   : > { %v3470_v46 = vadd.f32 %v3469_v34, %v3468_v22  ;;  %v3424_v26 = vrot.slane %v3423_v35, 2  ;;  %v3463_v37 = vadd.f32 %v3462_v36, %v3461_v25  ;;  %v3437_v47 = vadd.f32 %v3436_v40, %v3435_v28 }
 0x267   : > { %v3476_v48 = vrot.slane %v3475_v41, 4  ;;  %v3418_v49 = vadd.f32 %v3417_v42, %v3416_v31  ;;  %v3457_v50 = vrot.slane %v3456_v44, 2  ;;  %v3432_v51 = vadd.f32 %v3431_v45, %v3430_v33 }
 0x268   : > { %v3471_v52 = vrot.slane %v3470_v46, 2  ;;  %v3425_v53 = vadd.f32 %v3424_v26, %v3423_v35  ;;  %v3464_v54 = vrot.slane %v3463_v37, 2  ;;  %v3438_v27 = vrot.slane %v3437_v47, 2 }
 0x269   : > { %v3477_v39 = vadd.f32 %v3476_v48, %v3475_v41  ;;  %v3419_v55 = vrot.slane %v3418_v49, 1  ;;  %v3458_v9 = vadd.f32 %v3457_v50, %v3456_v44  ;;  %v3433_v24 = vrot.slane %v3432_v51, 1 }
 0x26a   : > { %v3472_v56 = vadd.f32 %v3471_v52, %v3470_v46  ;;  %v3426_v57 = vrot.slane %v3425_v53, 1  ;;  %v3465_v59 = vadd.f32 %v3464_v54, %v3463_v37  ;;  %v3439_v61 = vadd.f32 %v3438_v27, %v3437_v47 }
 0x26b   : > { %v3478_v62 = vrot.slane %v3477_v39, 2  ;;  %v3420_v63 = vadd.f32 %v3419_v55, %v3418_v49  ;;  %v3459_v1 = vrot.slane %v3458_v9, 1  ;;  %v3434_v2 = vadd.f32 %v3433_v24, %v3432_v51 }
 0x26c   : > { %v3473_v3 = vrot.slane %v3472_v56, 1  ;;  %v3427_v29 = vadd.f32 %v3426_v57, %v3425_v53  ;;  %v3466_v60 = vrot.slane %v3465_v59, 1  ;;  %v3440_v5 = vrot.slane %v3439_v61, 1 }
 0x26d   : > { %v3479_v6 = vadd.f32 %v3478_v62, %v3477_v39  ;;  %v3460_v7 = vadd.f32 %v3459_v1, %v3458_v9 }
 0x26e   : > { %v3474_v8 = vadd.f32 %v3473_v3, %v3472_v56  ;;  %v3467_v10 = vadd.f32 %v3466_v60, %v3465_v59  ;;  %v3490_v11 = vcombine.low %v3420_v63, %v3427_v29  ;;  %v3441_v12 = vadd.f32 %v3440_v5, %v3439_v61 }
 0x26f   : > { %v3480_v13 = vrot.slane %v3479_v6, 1 }
 0x270   : > { %v3498_v0 = vrot.slane %v3490_v11, %v6338_v4  ;;  %v3524_v58 = vcombine.low %v3460_v7, %v3467_v10  ;;  %v3491_v15 = vcombine.low %v3434_v2, %v3441_v12 }
 0x271   : > { %v3481_v14 = vadd.f32 %v3480_v13, %v3479_v6 }
 0x272   : > { %v3532_v16 = vrot.slane %v3524_v58, %v6338_v4  ;;  %v3505_v17 = vrot.slane %v3491_v15, %v6338_v4 }
 0x273   : > { %v3525_v18 = vcombine.low %v3474_v8, %v3481_v14 }
 0x274   : > { %v3506_v19 = vcombine.low %v3498_v0, %v3505_v17 }
 0x275   : > { %v3539_v43 = vrot.slane %v3525_v18, %v6338_v4 }
 0x276   : > { %v3513_v20 = vrot.slane %v3506_v19, %v6338_v4 }
 0x277   : > { %v3540_v21 = vcombine.low %v3532_v16, %v3539_v43 }
 0x278   : > { %3519 = vst.msk [vmem:[%s268_s23] sm:$0xf] %vm3517_vm2, %v3513_v20 }
 0x279   : > { %v3547_v22 = vrot.slane %v3540_v21, %v6338_v4 }
 0x27b   : > { %3549 = vst.msk [vmem:[%s272_s26] sm:$0xf] %vm3517_vm2, %v3547_v22 }
 0x27c PF: > { %s17_s21 = sadd.s32 1, %s4982_s21  }
 0x27d   : > { %p14_p4 = scmp.ge.s32.totalorder %s17_s21, 4  }
 0x27f   :  { %16 = sbr.rel (!%p14_p4) target bundleno = 1 (0x1), region = 92 }

</bundles_post_ra>
